<compile_context>
chip_gen: v7x
topology: tpu7x:2x2x1
jax: 0.10.0
libtpu: 0.0.40
codegen_flags: <defaults>
</compile_context>

<pallas_src>
import functools
import math

import jax
import jax.numpy as jnp
from jax.experimental import pallas as pl
from jax.experimental.pallas import tpu as pltpu


# ----------------------------- in-kernel helpers -----------------------------

def _erf(x):
    # Abramowitz & Stegun 7.1.26 rational approximation (max abs err ~1.5e-7),
    # built from mul/add/exp + EUP reciprocal so it lowers cleanly in Mosaic.
    a1, a2, a3, a4, a5 = 0.254829592, -0.284496736, 1.421413741, -1.453152027, 1.061405429
    p = 0.3275911
    sgn = jnp.where(x >= 0.0, 1.0, -1.0).astype(x.dtype)
    ax = jnp.where(x >= 0.0, x, -x)
    t = pl.reciprocal(1.0 + p * ax, approx=True)
    poly = ((((a5 * t + a4) * t + a3) * t + a2) * t + a1) * t
    y = 1.0 - poly * jnp.exp(-ax * ax)
    return sgn * y


def _gelu_exact(x):
    # nn.GELU() default = exact erf-based GELU.
    return 0.5 * x * (1.0 + _erf(x * 0.7071067811865476))


def _layernorm(x, gamma, beta, eps=1e-5):
    mu = jnp.mean(x, axis=-1, keepdims=True)
    xc = x - mu
    var = jnp.mean(xc * xc, axis=-1, keepdims=True)
    return xc * jax.lax.rsqrt(var + eps) * gamma + beta


# --------------------------------- kernel ------------------------------------

def transformer_block_kernel(
    xq_ref,                                   # (1, Sq, D) f32   query-row tile of x
    xf_ref,                                   # (1, S,  D) f32   full sequence (for K/V)
    wq_ref, bq_ref,                           # (D, D) bf16, (1, D) f32
    wkv_ref, bkv_ref,                         # (D, 2D) bf16, (1, 2D) f32   [K | V]
    wo_ref, bo_ref,                           # (D, D) bf16, (1, D) f32
    ln1_g_ref, ln1_b_ref,                     # (1, D) f32
    w1_ref, b1_ref,                           # (D, 4D) bf16, (1, 4D) f32
    w2_ref, b2_ref,                           # (4D, D) bf16, (1, D) f32
    ln2_g_ref, ln2_b_ref,                     # (1, D) f32
    out_ref,                                  # (1, Sq, D) f32
    o_scratch,                                # VMEM (Sq, D) f32
    *, num_heads,
):
    xq = xq_ref[0]                            # (Sq, D) f32
    xf = xf_ref[0]                            # (S,  D) f32
    Sq, D = xq.shape
    S = xf.shape[0]
    H = num_heads
    hd = D // H
    scale = 1.0 / math.sqrt(hd)

    # Fused, MXU-shaped projections (bf16 operands, f32 accumulation), biases
    # folded into a single broadcast add each.
    q = jnp.dot(xq.astype(jnp.bfloat16), wq_ref[...],
                preferred_element_type=jnp.float32) + bq_ref[...]          # (Sq, D)
    kv = jnp.dot(xf.astype(jnp.bfloat16), wkv_ref[...],
                 preferred_element_type=jnp.float32) + bkv_ref[...]        # (S, 2D)

    # Boolean causal mask for this query tile (never materialized as f32 additive mask).
    q0 = pl.program_id(1) * Sq
    row = jax.lax.broadcasted_iota(jnp.int32, (Sq, S), 0) + q0
    col = jax.lax.broadcasted_iota(jnp.int32, (Sq, S), 1)
    keep = col <= row

    # Per-head attention core; per-head outputs land in VMEM scratch at their
    # lane offsets (no carried register accumulator, no lane-dim concat).
    for h in range(H):
        lo, hi = h * hd, (h + 1) * hd
        q_h = q[:, lo:hi]                     # (Sq, hd)
        k_h = kv[:, lo:hi]                    # (S,  hd)
        v_h = kv[:, D + lo:D + hi]            # (S,  hd)
        s = jax.lax.dot_general(q_h, k_h, (((1,), (1,)), ((), ())),
                                preferred_element_type=jnp.float32)        # (Sq, S)
        s = jnp.where(keep, s * scale, jnp.float32(-1e30))
        m = jnp.max(s, axis=-1, keepdims=True)
        e = jnp.exp(s - m)
        inv = pl.reciprocal(jnp.sum(e, axis=-1, keepdims=True), approx=True)
        p = e * inv
        o_scratch[:, lo:hi] = jnp.dot(p, v_h, preferred_element_type=jnp.float32)

    # Single big output projection over all heads.
    attn = jnp.dot(o_scratch[...].astype(jnp.bfloat16), wo_ref[...],
                   preferred_element_type=jnp.float32) + bo_ref[...]       # (Sq, D)

    # residual + LayerNorm 1 (f32)
    y = _layernorm(xq + attn, ln1_g_ref[...], ln1_b_ref[...])

    # MLP: Linear -> GELU(exact) -> Linear (bf16 matmul operands, f32 epilogue)
    h1 = jnp.dot(y.astype(jnp.bfloat16), w1_ref[...],
                 preferred_element_type=jnp.float32) + b1_ref[...]
    h1 = _gelu_exact(h1)
    m2 = jnp.dot(h1.astype(jnp.bfloat16), w2_ref[...],
                 preferred_element_type=jnp.float32) + b2_ref[...]

    # residual + LayerNorm 2
    out_ref[0] = _layernorm(y + m2, ln2_g_ref[...], ln2_b_ref[...])


# --------------------------------- wrapper -----------------------------------

def transformer_block(x, params, num_heads):
    (W_in, b_in, W_out, b_out, g1, beta1, W1, b1, W2, b2, g2, beta2) = params
    B, S, D = x.shape
    H = num_heads

    # Query-row tile size (tile seq for VMEM on v7x; full S when small).
    if S <= 128:
        Sq = S
    elif S % 128 == 0:
        Sq = 128
    else:
        Sq = S
    n_q = S // Sq

    bf = jnp.bfloat16
    # Fused projection weights (PyTorch stores (out, in); we use x @ W.T layout).
    wq = W_in[:D].T.astype(bf)                     # (D, D)
    wkv = W_in[D:].T.astype(bf)                    # (D, 2D)  columns = [K | V]
    bq = b_in[:D].reshape(1, D)
    bkv = b_in[D:].reshape(1, 2 * D)
    wo = W_out.T.astype(bf)                        # (D, D)
    bo = b_out.reshape(1, D)
    w1t = W1.T.astype(bf)                          # (D, 4D)
    b1r = b1.reshape(1, 4 * D)
    w2t = W2.T.astype(bf)                          # (4D, D)
    b2r = b2.reshape(1, D)
    g1r, beta1r = g1.reshape(1, D), beta1.reshape(1, D)
    g2r, beta2r = g2.reshape(1, D), beta2.reshape(1, D)

    args = (x, x, wq, bq, wkv, bkv, wo, bo,
            g1r, beta1r, w1t, b1r, w2t, b2r, g2r, beta2r)

    def const_spec(shape):
        r = len(shape)
        return pl.BlockSpec(shape, lambda b, qi, _r=r: (0,) * _r)

    in_specs = [
        pl.BlockSpec((1, Sq, D), lambda b, qi: (b, qi, 0)),   # query-row tile of x
        pl.BlockSpec((1, S, D), lambda b, qi: (b, 0, 0)),     # full x for K/V
    ] + [const_spec(a.shape) for a in args[2:]]

    kernel = functools.partial(transformer_block_kernel, num_heads=H)

    return pl.pallas_call(
        kernel,
        out_shape=jax.ShapeDtypeStruct((B, S, D), jnp.float32),
        grid=(B, n_q),
        in_specs=in_specs,
        out_specs=pl.BlockSpec((1, Sq, D), lambda b, qi: (b, qi, 0)),
        scratch_shapes=[pltpu.VMEM((Sq, D), jnp.float32)],
        compiler_params=pltpu.CompilerParams(
            dimension_semantics=("parallel", "parallel")),
    )(*args)


# ------------------------------ pure-JAX reference ----------------------------

def reference_forward(x, params, num_heads):
    (W_in, b_in, W_out, b_out, g1, beta1, W1, b1, W2, b2, g2, beta2) = params
    B, S, D = x.shape
    H, hd = num_heads, D // num_heads

    def ln(v, g, b, eps=1e-5):
        mu = v.mean(-1, keepdims=True)
        var = ((v - mu) ** 2).mean(-1, keepdims=True)
        return (v - mu) / jnp.sqrt(var + eps) * g + b

    q = x @ W_in[:D].T + b_in[:D]
    k = x @ W_in[D:2 * D].T + b_in[D:2 * D]
    v = x @ W_in[2 * D:].T + b_in[2 * D:]
    qh = q.reshape(B, S, H, hd).transpose(0, 2, 1, 3)
    kh = k.reshape(B, S, H, hd).transpose(0, 2, 1, 3)
    vh = v.reshape(B, S, H, hd).transpose(0, 2, 1, 3)
    scores = qh @ kh.transpose(0, 1, 3, 2) / math.sqrt(hd)
    causal = jnp.where(jnp.tril(jnp.ones((S, S), bool)), 0.0, -jnp.inf)
    scores = scores + causal
    p = jax.nn.softmax(scores, axis=-1)
    o = (p @ vh).transpose(0, 2, 1, 3).reshape(B, S, D)
    attn = o @ W_out.T + b_out
    y = ln(x + attn, g1, beta1)
    m = jax.nn.gelu(y @ W1.T + b1, approximate=False) @ W2.T + b2
    return ln(y + m, g2, beta2)


# ----------------------------------- main -------------------------------------

if __name__ == "__main__":
    B, S, D, H = 2, 8, 32, 8            # batch=2, seq=8, hidden=32, heads=8 (hd=4)
    key = jax.random.PRNGKey(0)
    ks = jax.random.split(key, 10)

    # Deterministic synthetic parameters (shapes match nn.MultiheadAttention /
    # nn.LayerNorm / nn.Linear). LayerNorm uses PyTorch default init.
    W_in = 0.1 * jax.random.normal(ks[0], (3 * D, D), jnp.float32)
    b_in = 0.1 * jax.random.normal(ks[1], (3 * D,), jnp.float32)
    W_out = 0.1 * jax.random.normal(ks[2], (D, D), jnp.float32)
    b_out = 0.1 * jax.random.normal(ks[3], (D,), jnp.float32)
    g1, beta1 = jnp.ones((D,), jnp.float32), jnp.zeros((D,), jnp.float32)
    W1 = 0.1 * jax.random.normal(ks[4], (4 * D, D), jnp.float32)
    b1 = 0.1 * jax.random.normal(ks[5], (4 * D,), jnp.float32)
    W2 = 0.1 * jax.random.normal(ks[6], (D, 4 * D), jnp.float32)
    b2 = 0.1 * jax.random.normal(ks[7], (D,), jnp.float32)
    g2, beta2 = jnp.ones((D,), jnp.float32), jnp.zeros((D,), jnp.float32)
    params = (W_in, b_in, W_out, b_out, g1, beta1, W1, b1, W2, b2, g2, beta2)

    x = jax.random.normal(ks[8], (B, S, D), jnp.float32)

    out = transformer_block(x, params, num_heads=H)
    out = jax.block_until_ready(out)

    ref = reference_forward(x, params, num_heads=H)
    assert out.shape == (B, S, D)
    # bf16 matmul operands (f32 accumulation) -> slightly looser tolerance than pure f32.
    assert jnp.max(jnp.abs(out - ref)) < 5e-2, float(jnp.max(jnp.abs(out - ref)))

    print("KERNEL_OK")
</pallas_src>

<mosaic_0001>
module attributes {stable_mosaic.version = 11 : i64} {
  func.func @transformer_block_kernel(%arg0: i32, %arg1: i32, %arg2: memref<1x8x32xf32, #tpu.memory_space<vmem>>, %arg3: memref<1x8x32xf32, #tpu.memory_space<vmem>>, %arg4: memref<32x32xbf16, #tpu.memory_space<vmem>>, %arg5: memref<1x32xf32, #tpu.memory_space<vmem>>, %arg6: memref<32x64xbf16, #tpu.memory_space<vmem>>, %arg7: memref<1x64xf32, #tpu.memory_space<vmem>>, %arg8: memref<32x32xbf16, #tpu.memory_space<vmem>>, %arg9: memref<1x32xf32, #tpu.memory_space<vmem>>, %arg10: memref<1x32xf32, #tpu.memory_space<vmem>>, %arg11: memref<1x32xf32, #tpu.memory_space<vmem>>, %arg12: memref<32x128xbf16, #tpu.memory_space<vmem>>, %arg13: memref<1x128xf32, #tpu.memory_space<vmem>>, %arg14: memref<128x32xbf16, #tpu.memory_space<vmem>>, %arg15: memref<1x32xf32, #tpu.memory_space<vmem>>, %arg16: memref<1x32xf32, #tpu.memory_space<vmem>>, %arg17: memref<1x32xf32, #tpu.memory_space<vmem>>, %arg18: memref<1x8x32xf32, #tpu.memory_space<vmem>>, %arg19: memref<8x32xf32, #tpu.memory_space<vmem>>) attributes {dimension_semantics = [#tpu.dimension_semantics<parallel>, #tpu.dimension_semantics<parallel>], iteration_bounds = array<i64: 2, 1>, scalar_prefetch = 0 : i64, scratch_operands = 1 : i64, tpu.core_type = #tpu.core_type<tc>, window_params = [{transform_indices = @transform_0, window_bounds = array<i64: 1, 8, 32>}, {transform_indices = @transform_1, window_bounds = array<i64: 1, 8, 32>}, {pipeline_mode = #tpu.pipeline_mode<synchronous>, transform_indices = @transform_2, window_bounds = array<i64: 32, 32>}, {pipeline_mode = #tpu.pipeline_mode<synchronous>, transform_indices = @transform_3, window_bounds = array<i64: 1, 32>}, {pipeline_mode = #tpu.pipeline_mode<synchronous>, transform_indices = @transform_4, window_bounds = array<i64: 32, 64>}, {pipeline_mode = #tpu.pipeline_mode<synchronous>, transform_indices = @transform_5, window_bounds = array<i64: 1, 64>}, {pipeline_mode = #tpu.pipeline_mode<synchronous>, transform_indices = @transform_6, window_bounds = array<i64: 32, 32>}, {pipeline_mode = #tpu.pipeline_mode<synchronous>, transform_indices = @transform_7, window_bounds = array<i64: 1, 32>}, {pipeline_mode = #tpu.pipeline_mode<synchronous>, transform_indices = @transform_8, window_bounds = array<i64: 1, 32>}, {pipeline_mode = #tpu.pipeline_mode<synchronous>, transform_indices = @transform_9, window_bounds = array<i64: 1, 32>}, {pipeline_mode = #tpu.pipeline_mode<synchronous>, transform_indices = @transform_10, window_bounds = array<i64: 32, 128>}, {pipeline_mode = #tpu.pipeline_mode<synchronous>, transform_indices = @transform_11, window_bounds = array<i64: 1, 128>}, {pipeline_mode = #tpu.pipeline_mode<synchronous>, transform_indices = @transform_12, window_bounds = array<i64: 128, 32>}, {pipeline_mode = #tpu.pipeline_mode<synchronous>, transform_indices = @transform_13, window_bounds = array<i64: 1, 32>}, {pipeline_mode = #tpu.pipeline_mode<synchronous>, transform_indices = @transform_14, window_bounds = array<i64: 1, 32>}, {pipeline_mode = #tpu.pipeline_mode<synchronous>, transform_indices = @transform_15, window_bounds = array<i64: 1, 32>}, {transform_indices = @transform_16, window_bounds = array<i64: 1, 8, 32>}]} {
    %c0 = arith.constant 0 : index
    %c0_0 = arith.constant 0 : index
    %c0_1 = arith.constant 0 : index
    %0 = vector.load %arg2[%c0, %c0_0, %c0_1] : memref<1x8x32xf32, #tpu.memory_space<vmem>>, vector<1x8x32xf32>
    %1 = vector.shape_cast %0 : vector<1x8x32xf32> to vector<8x32xf32>
    %c0_2 = arith.constant 0 : index
    %c0_3 = arith.constant 0 : index
    %c0_4 = arith.constant 0 : index
    %2 = vector.load %arg3[%c0_2, %c0_3, %c0_4] : memref<1x8x32xf32, #tpu.memory_space<vmem>>, vector<1x8x32xf32>
    %3 = vector.shape_cast %2 : vector<1x8x32xf32> to vector<8x32xf32>
    %4 = arith.truncf %1 : vector<8x32xf32> to vector<8x32xbf16>
    %c0_5 = arith.constant 0 : index
    %c0_6 = arith.constant 0 : index
    %5 = vector.load %arg4[%c0_5, %c0_6] : memref<32x32xbf16, #tpu.memory_space<vmem>>, vector<32x32xbf16>
    %cst = arith.constant dense<0.000000e+00> : vector<8x32xf32>
    %6 = tpu.matmul %4, %5, %cst {dimension_numbers = #tpu.dot_dimension_numbers<[1], [0], [0], [1], [0, 0, 1, 1], [], []>} : vector<8x32xbf16>, vector<32x32xbf16>, vector<8x32xf32> -> vector<8x32xf32>
    %c0_7 = arith.constant 0 : index
    %c0_8 = arith.constant 0 : index
    %7 = vector.load %arg5[%c0_7, %c0_8] : memref<1x32xf32, #tpu.memory_space<vmem>>, vector<1x32xf32>
    %8 = vector.broadcast %7 : vector<1x32xf32> to vector<8x32xf32>
    %9 = arith.addf %6, %8 : vector<8x32xf32>
    %10 = arith.truncf %3 : vector<8x32xf32> to vector<8x32xbf16>
    %c0_9 = arith.constant 0 : index
    %c0_10 = arith.constant 0 : index
    %11 = vector.load %arg6[%c0_9, %c0_10] : memref<32x64xbf16, #tpu.memory_space<vmem>>, vector<32x64xbf16>
    %cst_11 = arith.constant dense<0.000000e+00> : vector<8x64xf32>
    %12 = tpu.matmul %10, %11, %cst_11 {dimension_numbers = #tpu.dot_dimension_numbers<[1], [0], [0], [1], [0, 0, 1, 1], [], []>} : vector<8x32xbf16>, vector<32x64xbf16>, vector<8x64xf32> -> vector<8x64xf32>
    %c0_12 = arith.constant 0 : index
    %c0_13 = arith.constant 0 : index
    %13 = vector.load %arg7[%c0_12, %c0_13] : memref<1x64xf32, #tpu.memory_space<vmem>>, vector<1x64xf32>
    %14 = vector.broadcast %13 : vector<1x64xf32> to vector<8x64xf32>
    %15 = arith.addf %12, %14 : vector<8x64xf32>
    %c8_i32 = arith.constant 8 : i32
    %16 = arith.muli %arg1, %c8_i32 : i32
    %17 = tpu.iota {dimensions = array<i32: 0>} : vector<8x8xi32>
    %18 = vector.broadcast %16 : i32 to vector<8x8xi32>
    %19 = arith.addi %17, %18 : vector<8x8xi32>
    %20 = tpu.iota {dimensions = array<i32: 1>} : vector<8x8xi32>
    %21 = arith.cmpi sle, %20, %19 : vector<8x8xi32>
    %22 = vector.extract_strided_slice %9 {offsets = [0, 0], sizes = [8, 4], strides = [1, 1]} : vector<8x32xf32> to vector<8x4xf32>
    %23 = vector.extract_strided_slice %15 {offsets = [0, 0], sizes = [8, 4], strides = [1, 1]} : vector<8x64xf32> to vector<8x4xf32>
    %24 = vector.extract_strided_slice %15 {offsets = [0, 32], sizes = [8, 4], strides = [1, 1]} : vector<8x64xf32> to vector<8x4xf32>
    %cst_14 = arith.constant dense<0.000000e+00> : vector<8x8xf32>
    %25 = tpu.matmul %22, %23, %cst_14 {dimension_numbers = #tpu.dot_dimension_numbers<[1], [1], [0], [0], [0, 0, 1, 0], [], []>} : vector<8x4xf32>, vector<8x4xf32>, vector<8x8xf32> -> vector<8x8xf32>
    %cst_15 = arith.constant 5.000000e-01 : f32
    %26 = vector.broadcast %cst_15 : f32 to vector<8x8xf32>
    %27 = arith.mulf %25, %26 : vector<8x8xf32>
    %cst_16 = arith.constant -1.000000e+30 : f32
    %28 = vector.broadcast %cst_16 : f32 to vector<8x8xf32>
    %29 = arith.select %21, %27, %28 : vector<8x8xi1>, vector<8x8xf32>
    %cst_17 = arith.constant dense<0xFF800000> : vector<8xf32>
    %30 = vector.multi_reduction <maximumf>, %29, %cst_17 [1] : vector<8x8xf32> to vector<8xf32>
    %31 = vector.shape_cast %30 : vector<8xf32> to vector<8x1xf32>
    %32 = vector.broadcast %31 : vector<8x1xf32> to vector<8x8xf32>
    %33 = arith.subf %29, %32 : vector<8x8xf32>
    %34 = math.exp %33 : vector<8x8xf32>
    %cst_18 = arith.constant dense<0.000000e+00> : vector<8xf32>
    %35 = vector.multi_reduction <add>, %34, %cst_18 [1] : vector<8x8xf32> to vector<8xf32>
    %36 = vector.shape_cast %35 : vector<8xf32> to vector<8x1xf32>
    %37 = tpu.reciprocal %36 {approx = true} : vector<8x1xf32> -> vector<8x1xf32>
    %38 = vector.broadcast %37 : vector<8x1xf32> to vector<8x8xf32>
    %39 = arith.mulf %34, %38 : vector<8x8xf32>
    %cst_19 = arith.constant dense<0.000000e+00> : vector<8x4xf32>
    %40 = tpu.matmul %39, %24, %cst_19 {dimension_numbers = #tpu.dot_dimension_numbers<[1], [0], [0], [1], [0, 0, 1, 1], [], []>} : vector<8x8xf32>, vector<8x4xf32>, vector<8x4xf32> -> vector<8x4xf32>
    %c0_20 = arith.constant 0 : index
    %c0_21 = arith.constant 0 : index
    %41 = vector.load %arg19[%c0_20, %c0_21] : memref<8x32xf32, #tpu.memory_space<vmem>>, vector<8x4xf32>
    tpu.vector_store %arg19[%c0_20, %c0_21], %40 {strides = array<i32>} : memref<8x32xf32, #tpu.memory_space<vmem>>, vector<8x4xf32>,
    %42 = vector.extract_strided_slice %9 {offsets = [0, 4], sizes = [8, 4], strides = [1, 1]} : vector<8x32xf32> to vector<8x4xf32>
    %43 = vector.extract_strided_slice %15 {offsets = [0, 4], sizes = [8, 4], strides = [1, 1]} : vector<8x64xf32> to vector<8x4xf32>
    %44 = vector.extract_strided_slice %15 {offsets = [0, 36], sizes = [8, 4], strides = [1, 1]} : vector<8x64xf32> to vector<8x4xf32>
    %cst_22 = arith.constant dense<0.000000e+00> : vector<8x8xf32>
    %45 = tpu.matmul %42, %43, %cst_22 {dimension_numbers = #tpu.dot_dimension_numbers<[1], [1], [0], [0], [0, 0, 1, 0], [], []>} : vector<8x4xf32>, vector<8x4xf32>, vector<8x8xf32> -> vector<8x8xf32>
    %cst_23 = arith.constant 5.000000e-01 : f32
    %46 = vector.broadcast %cst_23 : f32 to vector<8x8xf32>
    %47 = arith.mulf %45, %46 : vector<8x8xf32>
    %cst_24 = arith.constant -1.000000e+30 : f32
    %48 = vector.broadcast %cst_24 : f32 to vector<8x8xf32>
    %49 = arith.select %21, %47, %48 : vector<8x8xi1>, vector<8x8xf32>
    %cst_25 = arith.constant dense<0xFF800000> : vector<8xf32>
    %50 = vector.multi_reduction <maximumf>, %49, %cst_25 [1] : vector<8x8xf32> to vector<8xf32>
    %51 = vector.shape_cast %50 : vector<8xf32> to vector<8x1xf32>
    %52 = vector.broadcast %51 : vector<8x1xf32> to vector<8x8xf32>
    %53 = arith.subf %49, %52 : vector<8x8xf32>
    %54 = math.exp %53 : vector<8x8xf32>
    %cst_26 = arith.constant dense<0.000000e+00> : vector<8xf32>
    %55 = vector.multi_reduction <add>, %54, %cst_26 [1] : vector<8x8xf32> to vector<8xf32>
    %56 = vector.shape_cast %55 : vector<8xf32> to vector<8x1xf32>
    %57 = tpu.reciprocal %56 {approx = true} : vector<8x1xf32> -> vector<8x1xf32>
    %58 = vector.broadcast %57 : vector<8x1xf32> to vector<8x8xf32>
    %59 = arith.mulf %54, %58 : vector<8x8xf32>
    %cst_27 = arith.constant dense<0.000000e+00> : vector<8x4xf32>
    %60 = tpu.matmul %59, %44, %cst_27 {dimension_numbers = #tpu.dot_dimension_numbers<[1], [0], [0], [1], [0, 0, 1, 1], [], []>} : vector<8x8xf32>, vector<8x4xf32>, vector<8x4xf32> -> vector<8x4xf32>
    %c0_28 = arith.constant 0 : index
    %c4 = arith.constant 4 : index
    %61 = vector.load %arg19[%c0_28, %c4] : memref<8x32xf32, #tpu.memory_space<vmem>>, vector<8x4xf32>
    tpu.vector_store %arg19[%c0_28, %c4], %60 {strides = array<i32>} : memref<8x32xf32, #tpu.memory_space<vmem>>, vector<8x4xf32>,
    %62 = vector.extract_strided_slice %9 {offsets = [0, 8], sizes = [8, 4], strides = [1, 1]} : vector<8x32xf32> to vector<8x4xf32>
    %63 = vector.extract_strided_slice %15 {offsets = [0, 8], sizes = [8, 4], strides = [1, 1]} : vector<8x64xf32> to vector<8x4xf32>
    %64 = vector.extract_strided_slice %15 {offsets = [0, 40], sizes = [8, 4], strides = [1, 1]} : vector<8x64xf32> to vector<8x4xf32>
    %cst_29 = arith.constant dense<0.000000e+00> : vector<8x8xf32>
    %65 = tpu.matmul %62, %63, %cst_29 {dimension_numbers = #tpu.dot_dimension_numbers<[1], [1], [0], [0], [0, 0, 1, 0], [], []>} : vector<8x4xf32>, vector<8x4xf32>, vector<8x8xf32> -> vector<8x8xf32>
    %cst_30 = arith.constant 5.000000e-01 : f32
    %66 = vector.broadcast %cst_30 : f32 to vector<8x8xf32>
    %67 = arith.mulf %65, %66 : vector<8x8xf32>
    %cst_31 = arith.constant -1.000000e+30 : f32
    %68 = vector.broadcast %cst_31 : f32 to vector<8x8xf32>
    %69 = arith.select %21, %67, %68 : vector<8x8xi1>, vector<8x8xf32>
    %cst_32 = arith.constant dense<0xFF800000> : vector<8xf32>
    %70 = vector.multi_reduction <maximumf>, %69, %cst_32 [1] : vector<8x8xf32> to vector<8xf32>
    %71 = vector.shape_cast %70 : vector<8xf32> to vector<8x1xf32>
    %72 = vector.broadcast %71 : vector<8x1xf32> to vector<8x8xf32>
    %73 = arith.subf %69, %72 : vector<8x8xf32>
    %74 = math.exp %73 : vector<8x8xf32>
    %cst_33 = arith.constant dense<0.000000e+00> : vector<8xf32>
    %75 = vector.multi_reduction <add>, %74, %cst_33 [1] : vector<8x8xf32> to vector<8xf32>
    %76 = vector.shape_cast %75 : vector<8xf32> to vector<8x1xf32>
    %77 = tpu.reciprocal %76 {approx = true} : vector<8x1xf32> -> vector<8x1xf32>
    %78 = vector.broadcast %77 : vector<8x1xf32> to vector<8x8xf32>
    %79 = arith.mulf %74, %78 : vector<8x8xf32>
    %cst_34 = arith.constant dense<0.000000e+00> : vector<8x4xf32>
    %80 = tpu.matmul %79, %64, %cst_34 {dimension_numbers = #tpu.dot_dimension_numbers<[1], [0], [0], [1], [0, 0, 1, 1], [], []>} : vector<8x8xf32>, vector<8x4xf32>, vector<8x4xf32> -> vector<8x4xf32>
    %c0_35 = arith.constant 0 : index
    %c8 = arith.constant 8 : index
    %81 = vector.load %arg19[%c0_35, %c8] : memref<8x32xf32, #tpu.memory_space<vmem>>, vector<8x4xf32>
    tpu.vector_store %arg19[%c0_35, %c8], %80 {strides = array<i32>} : memref<8x32xf32, #tpu.memory_space<vmem>>, vector<8x4xf32>,
    %82 = vector.extract_strided_slice %9 {offsets = [0, 12], sizes = [8, 4], strides = [1, 1]} : vector<8x32xf32> to vector<8x4xf32>
    %83 = vector.extract_strided_slice %15 {offsets = [0, 12], sizes = [8, 4], strides = [1, 1]} : vector<8x64xf32> to vector<8x4xf32>
    %84 = vector.extract_strided_slice %15 {offsets = [0, 44], sizes = [8, 4], strides = [1, 1]} : vector<8x64xf32> to vector<8x4xf32>
    %cst_36 = arith.constant dense<0.000000e+00> : vector<8x8xf32>
    %85 = tpu.matmul %82, %83, %cst_36 {dimension_numbers = #tpu.dot_dimension_numbers<[1], [1], [0], [0], [0, 0, 1, 0], [], []>} : vector<8x4xf32>, vector<8x4xf32>, vector<8x8xf32> -> vector<8x8xf32>
    %cst_37 = arith.constant 5.000000e-01 : f32
    %86 = vector.broadcast %cst_37 : f32 to vector<8x8xf32>
    %87 = arith.mulf %85, %86 : vector<8x8xf32>
    %cst_38 = arith.constant -1.000000e+30 : f32
    %88 = vector.broadcast %cst_38 : f32 to vector<8x8xf32>
    %89 = arith.select %21, %87, %88 : vector<8x8xi1>, vector<8x8xf32>
    %cst_39 = arith.constant dense<0xFF800000> : vector<8xf32>
    %90 = vector.multi_reduction <maximumf>, %89, %cst_39 [1] : vector<8x8xf32> to vector<8xf32>
    %91 = vector.shape_cast %90 : vector<8xf32> to vector<8x1xf32>
    %92 = vector.broadcast %91 : vector<8x1xf32> to vector<8x8xf32>
    %93 = arith.subf %89, %92 : vector<8x8xf32>
    %94 = math.exp %93 : vector<8x8xf32>
    %cst_40 = arith.constant dense<0.000000e+00> : vector<8xf32>
    %95 = vector.multi_reduction <add>, %94, %cst_40 [1] : vector<8x8xf32> to vector<8xf32>
    %96 = vector.shape_cast %95 : vector<8xf32> to vector<8x1xf32>
    %97 = tpu.reciprocal %96 {approx = true} : vector<8x1xf32> -> vector<8x1xf32>
    %98 = vector.broadcast %97 : vector<8x1xf32> to vector<8x8xf32>
    %99 = arith.mulf %94, %98 : vector<8x8xf32>
    %cst_41 = arith.constant dense<0.000000e+00> : vector<8x4xf32>
    %100 = tpu.matmul %99, %84, %cst_41 {dimension_numbers = #tpu.dot_dimension_numbers<[1], [0], [0], [1], [0, 0, 1, 1], [], []>} : vector<8x8xf32>, vector<8x4xf32>, vector<8x4xf32> -> vector<8x4xf32>
    %c0_42 = arith.constant 0 : index
    %c12 = arith.constant 12 : index
    %101 = vector.load %arg19[%c0_42, %c12] : memref<8x32xf32, #tpu.memory_space<vmem>>, vector<8x4xf32>
    tpu.vector_store %arg19[%c0_42, %c12], %100 {strides = array<i32>} : memref<8x32xf32, #tpu.memory_space<vmem>>, vector<8x4xf32>,
    %102 = vector.extract_strided_slice %9 {offsets = [0, 16], sizes = [8, 4], strides = [1, 1]} : vector<8x32xf32> to vector<8x4xf32>
    %103 = vector.extract_strided_slice %15 {offsets = [0, 16], sizes = [8, 4], strides = [1, 1]} : vector<8x64xf32> to vector<8x4xf32>
    %104 = vector.extract_strided_slice %15 {offsets = [0, 48], sizes = [8, 4], strides = [1, 1]} : vector<8x64xf32> to vector<8x4xf32>
    %cst_43 = arith.constant dense<0.000000e+00> : vector<8x8xf32>
    %105 = tpu.matmul %102, %103, %cst_43 {dimension_numbers = #tpu.dot_dimension_numbers<[1], [1], [0], [0], [0, 0, 1, 0], [], []>} : vector<8x4xf32>, vector<8x4xf32>, vector<8x8xf32> -> vector<8x8xf32>
    %cst_44 = arith.constant 5.000000e-01 : f32
    %106 = vector.broadcast %cst_44 : f32 to vector<8x8xf32>
    %107 = arith.mulf %105, %106 : vector<8x8xf32>
    %cst_45 = arith.constant -1.000000e+30 : f32
    %108 = vector.broadcast %cst_45 : f32 to vector<8x8xf32>
    %109 = arith.select %21, %107, %108 : vector<8x8xi1>, vector<8x8xf32>
    %cst_46 = arith.constant dense<0xFF800000> : vector<8xf32>
    %110 = vector.multi_reduction <maximumf>, %109, %cst_46 [1] : vector<8x8xf32> to vector<8xf32>
    %111 = vector.shape_cast %110 : vector<8xf32> to vector<8x1xf32>
    %112 = vector.broadcast %111 : vector<8x1xf32> to vector<8x8xf32>
    %113 = arith.subf %109, %112 : vector<8x8xf32>
    %114 = math.exp %113 : vector<8x8xf32>
    %cst_47 = arith.constant dense<0.000000e+00> : vector<8xf32>
    %115 = vector.multi_reduction <add>, %114, %cst_47 [1] : vector<8x8xf32> to vector<8xf32>
    %116 = vector.shape_cast %115 : vector<8xf32> to vector<8x1xf32>
    %117 = tpu.reciprocal %116 {approx = true} : vector<8x1xf32> -> vector<8x1xf32>
    %118 = vector.broadcast %117 : vector<8x1xf32> to vector<8x8xf32>
    %119 = arith.mulf %114, %118 : vector<8x8xf32>
    %cst_48 = arith.constant dense<0.000000e+00> : vector<8x4xf32>
    %120 = tpu.matmul %119, %104, %cst_48 {dimension_numbers = #tpu.dot_dimension_numbers<[1], [0], [0], [1], [0, 0, 1, 1], [], []>} : vector<8x8xf32>, vector<8x4xf32>, vector<8x4xf32> -> vector<8x4xf32>
    %c0_49 = arith.constant 0 : index
    %c16 = arith.constant 16 : index
    %121 = vector.load %arg19[%c0_49, %c16] : memref<8x32xf32, #tpu.memory_space<vmem>>, vector<8x4xf32>
    tpu.vector_store %arg19[%c0_49, %c16], %120 {strides = array<i32>} : memref<8x32xf32, #tpu.memory_space<vmem>>, vector<8x4xf32>,
    %122 = vector.extract_strided_slice %9 {offsets = [0, 20], sizes = [8, 4], strides = [1, 1]} : vector<8x32xf32> to vector<8x4xf32>
    %123 = vector.extract_strided_slice %15 {offsets = [0, 20], sizes = [8, 4], strides = [1, 1]} : vector<8x64xf32> to vector<8x4xf32>
    %124 = vector.extract_strided_slice %15 {offsets = [0, 52], sizes = [8, 4], strides = [1, 1]} : vector<8x64xf32> to vector<8x4xf32>
    %cst_50 = arith.constant dense<0.000000e+00> : vector<8x8xf32>
    %125 = tpu.matmul %122, %123, %cst_50 {dimension_numbers = #tpu.dot_dimension_numbers<[1], [1], [0], [0], [0, 0, 1, 0], [], []>} : vector<8x4xf32>, vector<8x4xf32>, vector<8x8xf32> -> vector<8x8xf32>
    %cst_51 = arith.constant 5.000000e-01 : f32
    %126 = vector.broadcast %cst_51 : f32 to vector<8x8xf32>
    %127 = arith.mulf %125, %126 : vector<8x8xf32>
    %cst_52 = arith.constant -1.000000e+30 : f32
    %128 = vector.broadcast %cst_52 : f32 to vector<8x8xf32>
    %129 = arith.select %21, %127, %128 : vector<8x8xi1>, vector<8x8xf32>
    %cst_53 = arith.constant dense<0xFF800000> : vector<8xf32>
    %130 = vector.multi_reduction <maximumf>, %129, %cst_53 [1] : vector<8x8xf32> to vector<8xf32>
    %131 = vector.shape_cast %130 : vector<8xf32> to vector<8x1xf32>
    %132 = vector.broadcast %131 : vector<8x1xf32> to vector<8x8xf32>
    %133 = arith.subf %129, %132 : vector<8x8xf32>
    %134 = math.exp %133 : vector<8x8xf32>
    %cst_54 = arith.constant dense<0.000000e+00> : vector<8xf32>
    %135 = vector.multi_reduction <add>, %134, %cst_54 [1] : vector<8x8xf32> to vector<8xf32>
    %136 = vector.shape_cast %135 : vector<8xf32> to vector<8x1xf32>
    %137 = tpu.reciprocal %136 {approx = true} : vector<8x1xf32> -> vector<8x1xf32>
    %138 = vector.broadcast %137 : vector<8x1xf32> to vector<8x8xf32>
    %139 = arith.mulf %134, %138 : vector<8x8xf32>
    %cst_55 = arith.constant dense<0.000000e+00> : vector<8x4xf32>
    %140 = tpu.matmul %139, %124, %cst_55 {dimension_numbers = #tpu.dot_dimension_numbers<[1], [0], [0], [1], [0, 0, 1, 1], [], []>} : vector<8x8xf32>, vector<8x4xf32>, vector<8x4xf32> -> vector<8x4xf32>
    %c0_56 = arith.constant 0 : index
    %c20 = arith.constant 20 : index
    %141 = vector.load %arg19[%c0_56, %c20] : memref<8x32xf32, #tpu.memory_space<vmem>>, vector<8x4xf32>
    tpu.vector_store %arg19[%c0_56, %c20], %140 {strides = array<i32>} : memref<8x32xf32, #tpu.memory_space<vmem>>, vector<8x4xf32>,
    %142 = vector.extract_strided_slice %9 {offsets = [0, 24], sizes = [8, 4], strides = [1, 1]} : vector<8x32xf32> to vector<8x4xf32>
    %143 = vector.extract_strided_slice %15 {offsets = [0, 24], sizes = [8, 4], strides = [1, 1]} : vector<8x64xf32> to vector<8x4xf32>
    %144 = vector.extract_strided_slice %15 {offsets = [0, 56], sizes = [8, 4], strides = [1, 1]} : vector<8x64xf32> to vector<8x4xf32>
    %cst_57 = arith.constant dense<0.000000e+00> : vector<8x8xf32>
    %145 = tpu.matmul %142, %143, %cst_57 {dimension_numbers = #tpu.dot_dimension_numbers<[1], [1], [0], [0], [0, 0, 1, 0], [], []>} : vector<8x4xf32>, vector<8x4xf32>, vector<8x8xf32> -> vector<8x8xf32>
    %cst_58 = arith.constant 5.000000e-01 : f32
    %146 = vector.broadcast %cst_58 : f32 to vector<8x8xf32>
    %147 = arith.mulf %145, %146 : vector<8x8xf32>
    %cst_59 = arith.constant -1.000000e+30 : f32
    %148 = vector.broadcast %cst_59 : f32 to vector<8x8xf32>
    %149 = arith.select %21, %147, %148 : vector<8x8xi1>, vector<8x8xf32>
    %cst_60 = arith.constant dense<0xFF800000> : vector<8xf32>
    %150 = vector.multi_reduction <maximumf>, %149, %cst_60 [1] : vector<8x8xf32> to vector<8xf32>
    %151 = vector.shape_cast %150 : vector<8xf32> to vector<8x1xf32>
    %152 = vector.broadcast %151 : vector<8x1xf32> to vector<8x8xf32>
    %153 = arith.subf %149, %152 : vector<8x8xf32>
    %154 = math.exp %153 : vector<8x8xf32>
    %cst_61 = arith.constant dense<0.000000e+00> : vector<8xf32>
    %155 = vector.multi_reduction <add>, %154, %cst_61 [1] : vector<8x8xf32> to vector<8xf32>
    %156 = vector.shape_cast %155 : vector<8xf32> to vector<8x1xf32>
    %157 = tpu.reciprocal %156 {approx = true} : vector<8x1xf32> -> vector<8x1xf32>
    %158 = vector.broadcast %157 : vector<8x1xf32> to vector<8x8xf32>
    %159 = arith.mulf %154, %158 : vector<8x8xf32>
    %cst_62 = arith.constant dense<0.000000e+00> : vector<8x4xf32>
    %160 = tpu.matmul %159, %144, %cst_62 {dimension_numbers = #tpu.dot_dimension_numbers<[1], [0], [0], [1], [0, 0, 1, 1], [], []>} : vector<8x8xf32>, vector<8x4xf32>, vector<8x4xf32> -> vector<8x4xf32>
    %c0_63 = arith.constant 0 : index
    %c24 = arith.constant 24 : index
    %161 = vector.load %arg19[%c0_63, %c24] : memref<8x32xf32, #tpu.memory_space<vmem>>, vector<8x4xf32>
    tpu.vector_store %arg19[%c0_63, %c24], %160 {strides = array<i32>} : memref<8x32xf32, #tpu.memory_space<vmem>>, vector<8x4xf32>,
    %162 = vector.extract_strided_slice %9 {offsets = [0, 28], sizes = [8, 4], strides = [1, 1]} : vector<8x32xf32> to vector<8x4xf32>
    %163 = vector.extract_strided_slice %15 {offsets = [0, 28], sizes = [8, 4], strides = [1, 1]} : vector<8x64xf32> to vector<8x4xf32>
    %164 = vector.extract_strided_slice %15 {offsets = [0, 60], sizes = [8, 4], strides = [1, 1]} : vector<8x64xf32> to vector<8x4xf32>
    %cst_64 = arith.constant dense<0.000000e+00> : vector<8x8xf32>
    %165 = tpu.matmul %162, %163, %cst_64 {dimension_numbers = #tpu.dot_dimension_numbers<[1], [1], [0], [0], [0, 0, 1, 0], [], []>} : vector<8x4xf32>, vector<8x4xf32>, vector<8x8xf32> -> vector<8x8xf32>
    %cst_65 = arith.constant 5.000000e-01 : f32
    %166 = vector.broadcast %cst_65 : f32 to vector<8x8xf32>
    %167 = arith.mulf %165, %166 : vector<8x8xf32>
    %cst_66 = arith.constant -1.000000e+30 : f32
    %168 = vector.broadcast %cst_66 : f32 to vector<8x8xf32>
    %169 = arith.select %21, %167, %168 : vector<8x8xi1>, vector<8x8xf32>
    %cst_67 = arith.constant dense<0xFF800000> : vector<8xf32>
    %170 = vector.multi_reduction <maximumf>, %169, %cst_67 [1] : vector<8x8xf32> to vector<8xf32>
    %171 = vector.shape_cast %170 : vector<8xf32> to vector<8x1xf32>
    %172 = vector.broadcast %171 : vector<8x1xf32> to vector<8x8xf32>
    %173 = arith.subf %169, %172 : vector<8x8xf32>
    %174 = math.exp %173 : vector<8x8xf32>
    %cst_68 = arith.constant dense<0.000000e+00> : vector<8xf32>
    %175 = vector.multi_reduction <add>, %174, %cst_68 [1] : vector<8x8xf32> to vector<8xf32>
    %176 = vector.shape_cast %175 : vector<8xf32> to vector<8x1xf32>
    %177 = tpu.reciprocal %176 {approx = true} : vector<8x1xf32> -> vector<8x1xf32>
    %178 = vector.broadcast %177 : vector<8x1xf32> to vector<8x8xf32>
    %179 = arith.mulf %174, %178 : vector<8x8xf32>
    %cst_69 = arith.constant dense<0.000000e+00> : vector<8x4xf32>
    %180 = tpu.matmul %179, %164, %cst_69 {dimension_numbers = #tpu.dot_dimension_numbers<[1], [0], [0], [1], [0, 0, 1, 1], [], []>} : vector<8x8xf32>, vector<8x4xf32>, vector<8x4xf32> -> vector<8x4xf32>
    %c0_70 = arith.constant 0 : index
    %c28 = arith.constant 28 : index
    %181 = vector.load %arg19[%c0_70, %c28] : memref<8x32xf32, #tpu.memory_space<vmem>>, vector<8x4xf32>
    tpu.vector_store %arg19[%c0_70, %c28], %180 {strides = array<i32>} : memref<8x32xf32, #tpu.memory_space<vmem>>, vector<8x4xf32>,
    %c0_71 = arith.constant 0 : index
    %c0_72 = arith.constant 0 : index
    %182 = vector.load %arg19[%c0_71, %c0_72] : memref<8x32xf32, #tpu.memory_space<vmem>>, vector<8x32xf32>
    %183 = arith.truncf %182 : vector<8x32xf32> to vector<8x32xbf16>
    %c0_73 = arith.constant 0 : index
    %c0_74 = arith.constant 0 : index
    %184 = vector.load %arg8[%c0_73, %c0_74] : memref<32x32xbf16, #tpu.memory_space<vmem>>, vector<32x32xbf16>
    %cst_75 = arith.constant dense<0.000000e+00> : vector<8x32xf32>
    %185 = tpu.matmul %183, %184, %cst_75 {dimension_numbers = #tpu.dot_dimension_numbers<[1], [0], [0], [1], [0, 0, 1, 1], [], []>} : vector<8x32xbf16>, vector<32x32xbf16>, vector<8x32xf32> -> vector<8x32xf32>
    %c0_76 = arith.constant 0 : index
    %c0_77 = arith.constant 0 : index
    %186 = vector.load %arg9[%c0_76, %c0_77] : memref<1x32xf32, #tpu.memory_space<vmem>>, vector<1x32xf32>
    %187 = vector.broadcast %186 : vector<1x32xf32> to vector<8x32xf32>
    %188 = arith.addf %185, %187 : vector<8x32xf32>
    %189 = arith.addf %1, %188 : vector<8x32xf32>
    %c0_78 = arith.constant 0 : index
    %c0_79 = arith.constant 0 : index
    %190 = vector.load %arg10[%c0_78, %c0_79] : memref<1x32xf32, #tpu.memory_space<vmem>>, vector<1x32xf32>
    %c0_80 = arith.constant 0 : index
    %c0_81 = arith.constant 0 : index
    %191 = vector.load %arg11[%c0_80, %c0_81] : memref<1x32xf32, #tpu.memory_space<vmem>>, vector<1x32xf32>
    %cst_82 = arith.constant dense<0.000000e+00> : vector<8xf32>
    %192 = vector.multi_reduction <add>, %189, %cst_82 [1] : vector<8x32xf32> to vector<8xf32>
    %193 = vector.shape_cast %192 : vector<8xf32> to vector<8x1xf32>
    %cst_83 = arith.constant 3.200000e+01 : f32
    %194 = vector.broadcast %cst_83 : f32 to vector<8x1xf32>
    %195 = arith.divf %193, %194 : vector<8x1xf32>
    %196 = vector.broadcast %195 : vector<8x1xf32> to vector<8x32xf32>
    %197 = arith.subf %189, %196 : vector<8x32xf32>
    %198 = arith.mulf %197, %197 : vector<8x32xf32>
    %cst_84 = arith.constant dense<0.000000e+00> : vector<8xf32>
    %199 = vector.multi_reduction <add>, %198, %cst_84 [1] : vector<8x32xf32> to vector<8xf32>
    %200 = vector.shape_cast %199 : vector<8xf32> to vector<8x1xf32>
    %cst_85 = arith.constant 3.200000e+01 : f32
    %201 = vector.broadcast %cst_85 : f32 to vector<8x1xf32>
    %202 = arith.divf %200, %201 : vector<8x1xf32>
    %cst_86 = arith.constant 9.99999974E-6 : f32
    %203 = vector.broadcast %cst_86 : f32 to vector<8x1xf32>
    %204 = arith.addf %202, %203 : vector<8x1xf32>
    %205 = math.rsqrt %204 : vector<8x1xf32>
    %206 = vector.broadcast %205 : vector<8x1xf32> to vector<8x32xf32>
    %207 = arith.mulf %197, %206 : vector<8x32xf32>
    %208 = vector.broadcast %190 : vector<1x32xf32> to vector<8x32xf32>
    %209 = arith.mulf %207, %208 : vector<8x32xf32>
    %210 = vector.broadcast %191 : vector<1x32xf32> to vector<8x32xf32>
    %211 = arith.addf %209, %210 : vector<8x32xf32>
    %212 = arith.truncf %211 : vector<8x32xf32> to vector<8x32xbf16>
    %c0_87 = arith.constant 0 : index
    %c0_88 = arith.constant 0 : index
    %213 = vector.load %arg12[%c0_87, %c0_88] : memref<32x128xbf16, #tpu.memory_space<vmem>>, vector<32x128xbf16>
    %cst_89 = arith.constant dense<0.000000e+00> : vector<8x128xf32>
    %214 = tpu.matmul %212, %213, %cst_89 {dimension_numbers = #tpu.dot_dimension_numbers<[1], [0], [0], [1], [0, 0, 1, 1], [], []>} : vector<8x32xbf16>, vector<32x128xbf16>, vector<8x128xf32> -> vector<8x128xf32>
    %c0_90 = arith.constant 0 : index
    %c0_91 = arith.constant 0 : index
    %215 = vector.load %arg13[%c0_90, %c0_91] : memref<1x128xf32, #tpu.memory_space<vmem>>, vector<1x128xf32>
    %216 = vector.broadcast %215 : vector<1x128xf32> to vector<8x128xf32>
    %217 = arith.addf %214, %216 : vector<8x128xf32>
    %cst_92 = arith.constant 5.000000e-01 : f32
    %218 = vector.broadcast %cst_92 : f32 to vector<8x128xf32>
    %219 = arith.mulf %218, %217 : vector<8x128xf32>
    %cst_93 = arith.constant 0.707106769 : f32
    %220 = vector.broadcast %cst_93 : f32 to vector<8x128xf32>
    %221 = arith.mulf %217, %220 : vector<8x128xf32>
    %cst_94 = arith.constant 0.000000e+00 : f32
    %222 = vector.broadcast %cst_94 : f32 to vector<8x128xf32>
    %223 = arith.cmpf oge, %221, %222 : vector<8x128xf32>
    %cst_95 = arith.constant 1.000000e+00 : f32
    %cst_96 = arith.constant -1.000000e+00 : f32
    %224 = vector.broadcast %cst_95 : f32 to vector<8x128xf32>
    %225 = vector.broadcast %cst_96 : f32 to vector<8x128xf32>
    %226 = arith.select %223, %224, %225 : vector<8x128xi1>, vector<8x128xf32>
    %cst_97 = arith.constant 0.000000e+00 : f32
    %227 = vector.broadcast %cst_97 : f32 to vector<8x128xf32>
    %228 = arith.cmpf oge, %221, %227 : vector<8x128xf32>
    %cst_98 = arith.constant 0.000000e+00 : f32
    %229 = vector.broadcast %cst_98 : f32 to vector<8x128xf32>
    %230 = arith.subf %229, %221 : vector<8x128xf32>
    %231 = arith.select %228, %221, %230 : vector<8x128xi1>, vector<8x128xf32>
    %cst_99 = arith.constant 0.327591091 : f32
    %232 = vector.broadcast %cst_99 : f32 to vector<8x128xf32>
    %233 = arith.mulf %232, %231 : vector<8x128xf32>
    %cst_100 = arith.constant 1.000000e+00 : f32
    %234 = vector.broadcast %cst_100 : f32 to vector<8x128xf32>
    %235 = arith.addf %234, %233 : vector<8x128xf32>
    %236 = tpu.reciprocal %235 {approx = true} : vector<8x128xf32> -> vector<8x128xf32>
    %cst_101 = arith.constant 1.06140542 : f32
    %237 = vector.broadcast %cst_101 : f32 to vector<8x128xf32>
    %238 = arith.mulf %237, %236 : vector<8x128xf32>
    %cst_102 = arith.constant -1.45315206 : f32
    %239 = vector.broadcast %cst_102 : f32 to vector<8x128xf32>
    %240 = arith.addf %238, %239 : vector<8x128xf32>
    %241 = arith.mulf %240, %236 : vector<8x128xf32>
    %cst_103 = arith.constant 1.42141378 : f32
    %242 = vector.broadcast %cst_103 : f32 to vector<8x128xf32>
    %243 = arith.addf %241, %242 : vector<8x128xf32>
    %244 = arith.mulf %243, %236 : vector<8x128xf32>
    %cst_104 = arith.constant -0.284496725 : f32
    %245 = vector.broadcast %cst_104 : f32 to vector<8x128xf32>
    %246 = arith.addf %244, %245 : vector<8x128xf32>
    %247 = arith.mulf %246, %236 : vector<8x128xf32>
    %cst_105 = arith.constant 0.254829586 : f32
    %248 = vector.broadcast %cst_105 : f32 to vector<8x128xf32>
    %249 = arith.addf %247, %248 : vector<8x128xf32>
    %250 = arith.mulf %249, %236 : vector<8x128xf32>
    %cst_106 = arith.constant 0.000000e+00 : f32
    %251 = vector.broadcast %cst_106 : f32 to vector<8x128xf32>
    %252 = arith.subf %251, %231 : vector<8x128xf32>
    %253 = arith.mulf %252, %231 : vector<8x128xf32>
    %254 = math.exp %253 : vector<8x128xf32>
    %255 = arith.mulf %250, %254 : vector<8x128xf32>
    %cst_107 = arith.constant 1.000000e+00 : f32
    %256 = vector.broadcast %cst_107 : f32 to vector<8x128xf32>
    %257 = arith.subf %256, %255 : vector<8x128xf32>
    %258 = arith.mulf %226, %257 : vector<8x128xf32>
    %cst_108 = arith.constant 1.000000e+00 : f32
    %259 = vector.broadcast %cst_108 : f32 to vector<8x128xf32>
    %260 = arith.addf %259, %258 : vector<8x128xf32>
    %261 = arith.mulf %219, %260 : vector<8x128xf32>
    %262 = arith.truncf %261 : vector<8x128xf32> to vector<8x128xbf16>
    %c0_109 = arith.constant 0 : index
    %c0_110 = arith.constant 0 : index
    %263 = vector.load %arg14[%c0_109, %c0_110] : memref<128x32xbf16, #tpu.memory_space<vmem>>, vector<128x32xbf16>
    %cst_111 = arith.constant dense<0.000000e+00> : vector<8x32xf32>
    %264 = tpu.matmul %262, %263, %cst_111 {dimension_numbers = #tpu.dot_dimension_numbers<[1], [0], [0], [1], [0, 0, 1, 1], [], []>} : vector<8x128xbf16>, vector<128x32xbf16>, vector<8x32xf32> -> vector<8x32xf32>
    %c0_112 = arith.constant 0 : index
    %c0_113 = arith.constant 0 : index
    %265 = vector.load %arg15[%c0_112, %c0_113] : memref<1x32xf32, #tpu.memory_space<vmem>>, vector<1x32xf32>
    %266 = vector.broadcast %265 : vector<1x32xf32> to vector<8x32xf32>
    %267 = arith.addf %264, %266 : vector<8x32xf32>
    %268 = arith.addf %211, %267 : vector<8x32xf32>
    %c0_114 = arith.constant 0 : index
    %c0_115 = arith.constant 0 : index
    %269 = vector.load %arg16[%c0_114, %c0_115] : memref<1x32xf32, #tpu.memory_space<vmem>>, vector<1x32xf32>
    %c0_116 = arith.constant 0 : index
    %c0_117 = arith.constant 0 : index
    %270 = vector.load %arg17[%c0_116, %c0_117] : memref<1x32xf32, #tpu.memory_space<vmem>>, vector<1x32xf32>
    %cst_118 = arith.constant dense<0.000000e+00> : vector<8xf32>
    %271 = vector.multi_reduction <add>, %268, %cst_118 [1] : vector<8x32xf32> to vector<8xf32>
    %272 = vector.shape_cast %271 : vector<8xf32> to vector<8x1xf32>
    %cst_119 = arith.constant 3.200000e+01 : f32
    %273 = vector.broadcast %cst_119 : f32 to vector<8x1xf32>
    %274 = arith.divf %272, %273 : vector<8x1xf32>
    %275 = vector.broadcast %274 : vector<8x1xf32> to vector<8x32xf32>
    %276 = arith.subf %268, %275 : vector<8x32xf32>
    %277 = arith.mulf %276, %276 : vector<8x32xf32>
    %cst_120 = arith.constant dense<0.000000e+00> : vector<8xf32>
    %278 = vector.multi_reduction <add>, %277, %cst_120 [1] : vector<8x32xf32> to vector<8xf32>
    %279 = vector.shape_cast %278 : vector<8xf32> to vector<8x1xf32>
    %cst_121 = arith.constant 3.200000e+01 : f32
    %280 = vector.broadcast %cst_121 : f32 to vector<8x1xf32>
    %281 = arith.divf %279, %280 : vector<8x1xf32>
    %cst_122 = arith.constant 9.99999974E-6 : f32
    %282 = vector.broadcast %cst_122 : f32 to vector<8x1xf32>
    %283 = arith.addf %281, %282 : vector<8x1xf32>
    %284 = math.rsqrt %283 : vector<8x1xf32>
    %285 = vector.broadcast %284 : vector<8x1xf32> to vector<8x32xf32>
    %286 = arith.mulf %276, %285 : vector<8x32xf32>
    %287 = vector.broadcast %269 : vector<1x32xf32> to vector<8x32xf32>
    %288 = arith.mulf %286, %287 : vector<8x32xf32>
    %289 = vector.broadcast %270 : vector<1x32xf32> to vector<8x32xf32>
    %290 = arith.addf %288, %289 : vector<8x32xf32>
    %c0_123 = arith.constant 0 : index
    %c0_124 = arith.constant 0 : index
    %c0_125 = arith.constant 0 : index
    %291 = vector.load %arg18[%c0_123, %c0_124, %c0_125] : memref<1x8x32xf32, #tpu.memory_space<vmem>>, vector<1x8x32xf32>
    %292 = vector.shape_cast %291 : vector<1x8x32xf32> to vector<8x32xf32>
    %293 = vector.shape_cast %290 : vector<8x32xf32> to vector<1x8x32xf32>
    tpu.vector_store %arg18[%c0_123, %c0_124, %c0_125], %293 {strides = array<i32>} : memref<1x8x32xf32, #tpu.memory_space<vmem>>, vector<1x8x32xf32>,
    return
  }
  func.func @transform_0(%arg0: i32, %arg1: i32) -> (i32, i32, i32) {
    %c0_i32 = arith.constant 0 : i32
    %c0_i32_0 = arith.constant 0 : i32
    return %arg0, %arg1, %c0_i32 : i32, i32, i32
  }
  func.func @transform_1(%arg0: i32, %arg1: i32) -> (i32, i32, i32) {
    %c0_i32 = arith.constant 0 : i32
    %c0_i32_0 = arith.constant 0 : i32
    %c0_i32_1 = arith.constant 0 : i32
    return %arg0, %c0_i32, %c0_i32_0 : i32, i32, i32
  }
  func.func @transform_2(%arg0: i32, %arg1: i32) -> (i32, i32) {
    %c0_i32 = arith.constant 0 : i32
    %c0_i32_0 = arith.constant 0 : i32
    %c0_i32_1 = arith.constant 0 : i32
    return %c0_i32, %c0_i32_0 : i32, i32
  }
  func.func @transform_3(%arg0: i32, %arg1: i32) -> (i32, i32) {
    %c0_i32 = arith.constant 0 : i32
    %c0_i32_0 = arith.constant 0 : i32
    %c0_i32_1 = arith.constant 0 : i32
    return %c0_i32, %c0_i32_0 : i32, i32
  }
  func.func @transform_4(%arg0: i32, %arg1: i32) -> (i32, i32) {
    %c0_i32 = arith.constant 0 : i32
    %c0_i32_0 = arith.constant 0 : i32
    %c0_i32_1 = arith.constant 0 : i32
    return %c0_i32, %c0_i32_0 : i32, i32
  }
  func.func @transform_5(%arg0: i32, %arg1: i32) -> (i32, i32) {
    %c0_i32 = arith.constant 0 : i32
    %c0_i32_0 = arith.constant 0 : i32
    %c0_i32_1 = arith.constant 0 : i32
    return %c0_i32, %c0_i32_0 : i32, i32
  }
  func.func @transform_6(%arg0: i32, %arg1: i32) -> (i32, i32) {
    %c0_i32 = arith.constant 0 : i32
    %c0_i32_0 = arith.constant 0 : i32
    %c0_i32_1 = arith.constant 0 : i32
    return %c0_i32, %c0_i32_0 : i32, i32
  }
  func.func @transform_7(%arg0: i32, %arg1: i32) -> (i32, i32) {
    %c0_i32 = arith.constant 0 : i32
    %c0_i32_0 = arith.constant 0 : i32
    %c0_i32_1 = arith.constant 0 : i32
    return %c0_i32, %c0_i32_0 : i32, i32
  }
  func.func @transform_8(%arg0: i32, %arg1: i32) -> (i32, i32) {
    %c0_i32 = arith.constant 0 : i32
    %c0_i32_0 = arith.constant 0 : i32
    %c0_i32_1 = arith.constant 0 : i32
    return %c0_i32, %c0_i32_0 : i32, i32
  }
  func.func @transform_9(%arg0: i32, %arg1: i32) -> (i32, i32) {
    %c0_i32 = arith.constant 0 : i32
    %c0_i32_0 = arith.constant 0 : i32
    %c0_i32_1 = arith.constant 0 : i32
    return %c0_i32, %c0_i32_0 : i32, i32
  }
  func.func @transform_10(%arg0: i32, %arg1: i32) -> (i32, i32) {
    %c0_i32 = arith.constant 0 : i32
    %c0_i32_0 = arith.constant 0 : i32
    %c0_i32_1 = arith.constant 0 : i32
    return %c0_i32, %c0_i32_0 : i32, i32
  }
  func.func @transform_11(%arg0: i32, %arg1: i32) -> (i32, i32) {
    %c0_i32 = arith.constant 0 : i32
    %c0_i32_0 = arith.constant 0 : i32
    %c0_i32_1 = arith.constant 0 : i32
    return %c0_i32, %c0_i32_0 : i32, i32
  }
  func.func @transform_12(%arg0: i32, %arg1: i32) -> (i32, i32) {
    %c0_i32 = arith.constant 0 : i32
    %c0_i32_0 = arith.constant 0 : i32
    %c0_i32_1 = arith.constant 0 : i32
    return %c0_i32, %c0_i32_0 : i32, i32
  }
  func.func @transform_13(%arg0: i32, %arg1: i32) -> (i32, i32) {
    %c0_i32 = arith.constant 0 : i32
    %c0_i32_0 = arith.constant 0 : i32
    %c0_i32_1 = arith.constant 0 : i32
    return %c0_i32, %c0_i32_0 : i32, i32
  }
  func.func @transform_14(%arg0: i32, %arg1: i32) -> (i32, i32) {
    %c0_i32 = arith.constant 0 : i32
    %c0_i32_0 = arith.constant 0 : i32
    %c0_i32_1 = arith.constant 0 : i32
    return %c0_i32, %c0_i32_0 : i32, i32
  }
  func.func @transform_15(%arg0: i32, %arg1: i32) -> (i32, i32) {
    %c0_i32 = arith.constant 0 : i32
    %c0_i32_0 = arith.constant 0 : i32
    %c0_i32_1 = arith.constant 0 : i32
    return %c0_i32, %c0_i32_0 : i32, i32
  }
  func.func @transform_16(%arg0: i32, %arg1: i32) -> (i32, i32, i32) {
    %c0_i32 = arith.constant 0 : i32
    %c0_i32_0 = arith.constant 0 : i32
    return %arg0, %arg1, %c0_i32 : i32, i32, i32
  }
}

</mosaic_0001>

<bundles_post_ra>
// kernel: tpu_custom_call.1
= control target key start
LH: loop header
LB: loop body
LE: loop exit
PB: predicated region body
PF: predicated region fallthrough
CT: control target
= control target key end

     0   :  { %s3769_s0 = inlined_call_operand.vmem [shape: f32[2,8,32], index: 0, kind: input, shape index: {}]   ;;  %s3770_s1 = inlined_call_operand.vmem [shape: f32[2,8,32], index: 1, kind: input, shape index: {}]   ;;  %s3771_s2 = inlined_call_operand.vmem [shape: bf16[32,32], index: 2, kind: input, shape index: {}]   ;;  %s3772_s3 = inlined_call_operand.vmem [shape: f32[1,32], index: 3, kind: input, shape index: {}]   ;;  %s3773_s4 = inlined_call_operand.vmem [shape: bf16[32,64], index: 4, kind: input, shape index: {}]   ;;  %s3774_s5 = inlined_call_operand.vmem [shape: f32[1,64], index: 5, kind: input, shape index: {}]   ;;  %s3775_s6 = inlined_call_operand.vmem [shape: bf16[32,32], index: 6, kind: input, shape index: {}]   ;;  %s3776_s7 = inlined_call_operand.hbm [shape: f32[1,32], index: 7, kind: input, shape index: {}]   ;;  %s3777_s8 = inlined_call_operand.hbm [shape: f32[1,32], index: 8, kind: input, shape index: {}]   ;;  %s3778_s9 = inlined_call_operand.hbm [shape: f32[1,32], index: 9, kind: input, shape index: {}]   ;;  %s3779_s10 = inlined_call_operand.vmem [shape: bf16[32,128], index: 10, kind: input, shape index: {}]   ;;  %s3780_s11 = inlined_call_operand.vmem [shape: f32[1,128], index: 11, kind: input, shape index: {}]   ;;  %s3781_s12 = inlined_call_operand.vmem [shape: bf16[128,32], index: 12, kind: input, shape index: {}]   ;;  %s3782_s13 = inlined_call_operand.vmem [shape: f32[1,32], index: 13, kind: input, shape index: {}]   ;;  %s3783_s14 = inlined_call_operand.vmem [shape: f32[1,32], index: 14, kind: input, shape index: {}]   ;;  %s3784_s15 = inlined_call_operand.vmem [shape: f32[1,32], index: 15, kind: input, shape index: {}]   ;;  %s3785_s16 = inlined_call_operand.hbm [shape: f32[2,8,32], index: 16, kind: output, shape index: {}]  }
   0x1   :  { %3798 = sst [smem:[#allocation20_spill]] %s3769_s0 }
   0x2   :  { %3799 = sst [smem:[#allocation21_spill]] %s3777_s8 }
   0x3   :  { %3800 = sst [smem:[#allocation22_spill]] %s3783_s14 }
   0x4   :  { %3801 = sst [smem:[#allocation23_spill]] %s3784_s15 }
   0x5   :  { %3802 = sst [smem:[#allocation24_spill]] %s3785_s16 }
   0x6   :  { %21 = vsyncpa [#allocation4], 0 }
   0x7   :  { %22 = vsyncpa [#allocation7], 0 }
   0x8   :  { %23 = vsyncpa [#allocation5], 0 }
   0x9   :  { %25 = vsyncpa [#allocation5 + $0x1], 0  ;;  %s3296_s21 = smov 0   ;;  %s3298_s22 = smov 0  }
   0xa   :  { %s3300_s23 = smov 0   ;;  %s3302_s24 = smov 0  }
   0xb   :  { %s3304_s25 = smov 0   ;;  %s3306_s26 = smov 0  }
   0xc LB: > { %3803 = sst [smem:[#allocation13_spill]] %s3160_s21  ;;  %s2587_s27 = sadd.s32 4294967295, %s3180_s26   ;;  %s3180_s26 = sphi %s3306_s26, %s31_s26   ;;  %s3176_s25 = sphi %s3304_s25, %s3833_s25   ;;  %s3172_s24 = sphi %s3302_s24, %s3832_s24   ;;  %s3168_s23 = sphi %s3300_s23, %s3831_s23   ;;  %s3164_s22 = sphi %s3298_s22, %s3835_s22   ;;  %s3160_s21 = sphi %s3296_s21, %s3834_s21  }
   0xd   : > { %3804 = sst [smem:[#allocation14_spill]] %s3168_s23  ;;  %s2588_s28 = sadd.s32 4294967294, %s3180_s26  }
   0xe   : > { %3805 = sst [smem:[#allocation15_spill]] %s3176_s25  ;;  %s43_s29 = sadd.s32 1, %s3176_s25 }
   0xf   : > { %3806 = sst [smem:[#allocation16_spill]] %s3180_s26  ;;  %s400_s30 = sadd.s32 1, %s3168_s23 }
  0x10   : > { %p45_p0 = scmp.ge.s32.totalorder %s43_s29, 2  ;;  %p410_p1 = scmp.ne.s32.totalorder %s3168_s23, %s3164_s22 }
  0x11   : > { %p411_p2 = scmp.eq.s32.totalorder %s2587_s27, 1  ;;  %p416_p3 = scmp.ne.s32.totalorder %s3164_s22, %s3160_s21 }
  0x12   : > { %s3837_s29 = smov (%p45_p0, %s43_s29), 0  ;;  %p417_p5 = scmp.eq.s32.totalorder %s2588_s28, 1 }
  0x13   : > { %3807 = sst [smem:[#allocation17_spill]] %s3837_s29  ;;  %p3336_p4 = por %p411_p2, %p410_p1 }
  0x14   : > { %s395_s17 = ssub.s32 %s3176_s25, %s3837_s29  ;;  %p2589_p6 = scmp.ge.s32.totalorder %s3180_s26, 1 }
  0x15   : > { %s3808_s0 = scalar_select %p3336_p4, 1, 0 }
  0x16   : > { %p398_p7 = scmp.eq.s32.totalorder %s395_s17, 0  ;;  %p3343_p8 = por %p417_p5, %p416_p3 }
  0x17   : > { %p424_p9 = scmp.lt.s32.totalorder %s3180_s26, 3  ;;  %p3355_p11 = scmp.eq.s32.totalorder %s2587_s27, 0 }
  0x18   : > { %s3809_s18 = scalar_select %p3343_p8, 1, 0 }
  0x19   : > { %s3349_s19 = scalar_select %p398_p7, %s3168_s23, %s400_s30  }
  0x1a   : > { %3810 = sst [smem:[#allocation18_spill]] %s3809_s18  ;;  %p3351_p10 = pnand %p2589_p6, %p424_p9 }
  0x1b   : > { %3811 = sst [smem:[#allocation19_spill]] %s3349_s19  ;;  %s3182_s28 = smov [#allocation6]  }
  0x1c   : > { %s3812_s20 = scalar_select %p3351_p10, 1, 0 }
  0x1d   : > { %s3813_s21 = scalar_select %p3355_p11, 1, 0 }
  0x1e   : > { %p2857_p12 = pneg %p3351_p10  ;;  %s463_s17 = sshll.u32 %s3182_s28, 4  ;;  %s464_s17 = int_to_ptr.vmem [resolvable:$true] %s463_s17 }
  0x1f   : > { %s3183_s30 = smov [#allocation3]   ;;  %s3815_s8 = sld [smem:[#allocation21_spill]] }
  0x20   : > { %p3363_p13 = pnand %p3355_p11, %p2857_p12  ;;  %s452_s25 = sshll.u32 %s3183_s30, 4  ;;  %s3367_s25 = int_to_ptr.vmem [resolvable:$true] %s452_s25 }
  0x22   : > { %p3377_p1 = pneg %p3363_p13 }
  0x25   : > { %s3010_s23 = scalar_lea.hbm %s3815_s8, 16 }
  0x26   : > { %p3011_p0 = scmp.ne.s32.totalorder %s3815_s8, %s3010_s23  ;;  %p3017_p5 = scmp.lt.u32.totalorder %s3010_s23, %s3815_s8 }
  0x28   : > { %p3013_p2 = pnand %p3377_p1, %p3011_p0 }
  0x2a   : > { %p3014_p3 = pneg %p3013_p2 }
  0x2c   : > { %p3019_p6 = pnand %p3017_p5, %p3014_p3 }
  0x2e   : > { %3022 = shalt.err (!%p3019_p6)
}
  0x2f   : > { %s3023_s19 = scalar_lea.vmem %s464_s17, 16  ;;  %s3030_s26 = scalar_lea.vmem %s464_s17, 32 }
  0x30   : > { %p3024_p7 = scmp.ne.s32.totalorder %s464_s17, %s3023_s19  ;;  %p3031_p8 = scmp.lt.s32.totalorder %s464_s17, %s464_s17 }
  0x31   : > { %p3032_p4 = scmp.lt.s32.totalorder %s3030_s26, %s3023_s19 }
  0x32   : > { %p3026_p9 = pnand %p3024_p7, %p3377_p1 }
  0x33   : > { %p3033_p11 = por %p3032_p4, %p3031_p8 }
  0x34   : > { %p3027_p12 = pneg %p3026_p9 }
  0x36   : > { %p3034_p10 = pnand %p3033_p11, %p3027_p12 }
  0x38   : > { %3037 = shalt.err (!%p3034_p10)
}
  0x39   : > { %2863 = dma.hbm_to_vmem [thread:$0]  (!%p3363_p13), %s3815_s8, 16, %s464_s17, [#allocation7]  }
  0x3a   : > { %s3038_s30 = scalar_lea.hbm %s3776_s7, 16 }
  0x3b   : > { %p3039_p0 = scmp.ne.s32.totalorder %s3776_s7, %s3038_s30  ;;  %p3045_p8 = scmp.lt.u32.totalorder %s3038_s30, %s3776_s7 }
  0x3d   : > { %p3041_p2 = pnand %p3039_p0, %p3377_p1 }
  0x3f   : > { %p3042_p4 = pneg %p3041_p2 }
  0x41   : > { %p3047_p10 = pnand %p3045_p8, %p3042_p4 }
  0x43   : > { %3050 = shalt.err (!%p3047_p10)
}
  0x44   : > { %s3051_s17 = scalar_lea.vmem %s3367_s25, 16  ;;  %s3058_s14 = scalar_lea.vmem %s3367_s25, 32 }
  0x45   : > { %p3052_p11 = scmp.ne.s32.totalorder %s3367_s25, %s3051_s17  ;;  %p3059_p6 = scmp.lt.s32.totalorder %s3367_s25, %s3367_s25 }
  0x46   : > { %p3060_p7 = scmp.lt.s32.totalorder %s3058_s14, %s3051_s17 }
  0x47   : > { %p3054_p3 = pnand %p3052_p11, %p3377_p1 }
  0x48   : > { %p3061_p9 = por %p3060_p7, %p3059_p6 }
  0x49   : > { %p3055_p5 = pneg %p3054_p3 }
  0x4b   : > { %p3062_p12 = pnand %p3061_p9, %p3055_p5 }
  0x4d   : > { %3065 = shalt.err (!%p3062_p12)
}
  0x4e   : > { %2860 = dma.hbm_to_vmem [thread:$0]  (!%p3363_p13), %s3776_s7, 16, %s3367_s25, [#allocation4]  }
  0x4f   : > { %s3184_s27 = smov [#allocation8]   ;;  %s3066_s19 = scalar_lea.hbm %s3778_s9, 16 }
  0x50   : > { %s474_s16 = sshll.u32 %s3184_s27, 4  ;;  %p3067_p0 = scmp.ne.s32.totalorder %s3778_s9, %s3066_s19  ;;  %s475_s16 = int_to_ptr.vmem [resolvable:$true] %s474_s16 }
  0x51   : > { %p3073_p8 = scmp.lt.u32.totalorder %s3066_s19, %s3778_s9 }
  0x52   : > { %p3069_p2 = pnand %p3067_p0, %p3377_p1 }
  0x54   : > { %p3070_p4 = pneg %p3069_p2 }
  0x56   : > { %p3075_p10 = pnand %p3073_p8, %p3070_p4 }
  0x58   : > { %3078 = shalt.err (!%p3075_p10)
}
  0x59   : > { %s3079_s25 = scalar_lea.vmem %s475_s16, 16  ;;  %s3086_s15 = scalar_lea.vmem %s475_s16, 32 }
  0x5a   : > { %p3080_p11 = scmp.ne.s32.totalorder %s475_s16, %s3079_s25  ;;  %p3087_p6 = scmp.lt.s32.totalorder %s475_s16, %s475_s16 }
  0x5b   : > { %p3088_p7 = scmp.lt.s32.totalorder %s3086_s15, %s3079_s25 }
  0x5c   : > { %p3082_p3 = pnand %p3080_p11, %p3377_p1 }
  0x5d   : > { %p3089_p9 = por %p3088_p7, %p3087_p6 }
  0x5e   : > { %p3083_p5 = pneg %p3082_p3 }
  0x60   : > { %p3090_p12 = pnand %p3089_p9, %p3083_p5 }
  0x62   : > { %3093 = shalt.err (!%p3090_p12)
}
  0x63   : > { %2866 = dma.hbm_to_vmem [thread:$0]  (!%p3363_p13), %s3778_s9, 16, %s475_s16, [#allocation7]  }
  0x64   : > { %p3817_p0 = scmp.ne.s32.totalorder %s3812_s20, 0 }
  0x65   : > { %p3818_p2 = scmp.ne.s32.totalorder (!%p3817_p0), %s3813_s21, 0 }
  0x66   : > { %522 = sbr.rel (%p3817_p0) target bundleno = 2737 (0xab1), region = 84 }
  0x6d   : > { %3147 = dma.done.wait (%p3818_p2), [#allocation4], 16  }
  0x6e   : > { %3149 = vsyncadd (%p3818_p2), [#allocation4], 4294967280 }
  0x6f   : > { %3151 = dma.done.wait (%p3818_p2), [#allocation7], 32  }
  0x70   : > { %3153 = vsyncadd (%p3818_p2), [#allocation7], 4294967264  ;;  %p586_p1 = scmp.lt.s32.totalorder %s3172_s24, 1  ;;  %v3185_v0 = vmov 0.0   ;;  %vm3186_vm0 = vmmov 0   ;;  %s3819_s28 = sld [smem:[#allocation20_spill]]  ;;  %v736_v36 = vlaneseq }
  0x71   : > { %2711 = vmatprep.subr.bf16.mxu1 %v3185_v0  ;;  %2715 = vmatprep.mubr.msk.bf16.mxu1 %vm3186_vm0, %v3185_v0  ;;  %v2954_v1 = vld [vmem:[%s3771_s2] sm:$0xff]   ;;  %v2955_v2 = vld [vmem:[%s3771_s2 + $0x8] sm:$0xff]   ;;  %vm624_vm1 = vcmask 261120   ;;  %vm743_vm2 = vcmask 31744   ;;  %s3188_s23 = smov 124   ;;  %s3189_s30 = smov 116  }
  0x72   : > { %s587_s8 = scalar_select %p586_p1, %s3172_s24, 1  ;;  %2737 = vmatprep.subr.mxu0 %v3185_v0  ;;  %2739 = vmatprep.mubr.msk.f32.mxu0 %vm3186_vm0, %v3185_v0  ;;  %v2956_v4 = vld [vmem:[%s3773_s4] sm:$0xff]   ;;  %v2957_v6 = vld [vmem:[%s3773_s4 + $0x8] sm:$0xff]   ;;  %v737_v37 = vshrl.u32 %v736_v36, 7  ;;  %v741_v38 = vand.u32 127, %v736_v36  ;;  %vm822_vm4 = vcmask 64512  }
  0x73   : > { %2712 = vmatpush3.bf16.msra.mxu1 %v2954_v1  ;;  %v2605_v13 = vld [vmem:[%s3774_s5] ss:$0 sm:$0xff]  ;;  %s3190_s19 = smov 112   ;;  %s3191_s26 = smov 108   ;;  %vm1082_vm5 = vcmask 64544   ;;  %vm1255_vm6 = vcmask 97344  }
  0x74   : > { %s2599_s29 = sshll.u32 %s587_s8, 3  ;;  %2713 = vmatprep.subr.bf16.mxu1 %v3185_v0  ;;  %v2601_v17 = vld [vmem:[%s3772_s3] ss:$0 sm:$0xff]  ;;  %s3192_s17 = smov 104   ;;  %vm3544_vm3 = vcmp.le.s32.totalorder %v741_v38, %v737_v37  ;;  %vm1428_vm7 = vcmask 130144   ;;  %vm1601_vm8 = vcmask 162944  }
  0x75   : > { %s596_s18 = scalar_lea.vmem %s3770_s1, %s2599_s29  ;;  %s3193_s14 = smov 100   ;;  %vm1774_vm9 = vcmask 195744   ;;  %vm1947_vm10 = vcmask 228544   ;;  %vm2120_vm11 = vcmask 261344  }
  0x76   : > { %s592_s16 = scalar_lea.vmem %s3819_s28, %s2599_s29  ;;  %v599_v7 = vld [vmem:[%s596_s18] sm:$0xff]  ;;  %s3194_s25 = smov 92  }
  0x77   : > { %v3462_v3 = vld [vmem:[%s592_s16] sm:$0xff]  ;;  %2714 = vmatpush3.bf16.msra.mxu1 %v2955_v2  ;;  %v668_v8 = vpack.c.bf16 %v599_v7, %v599_v7  ;;  %s3187_s16 = smov 120   ;;  %s3195_s15 = smov 96  }
  0x78   : > { %v600_v5 = vpack.c.bf16 %v3462_v3, %v3462_v3  ;;  %2719 = vmatprep.subr.bf16.mxu1 %v3185_v0  ;;  %s3196_s18 = smov 84   ;;  %s3197_s27 = smov 88  }
  0x79   : > { %s3198_s8 = smov 76   ;;  %s3199_s29 = smov 80  }
  0x7a   : > { %2716 = vmatmul.mubr.msk.bf16.vlgmr.msra.gmra.mrb[0].mxu1 %vm624_vm1, %v600_v5  ;;  %s3200_s20 = smov 68   ;;  %s3201_s21 = smov 72  }
  0x7b   : > { %2720 = vmatpush3.bf16.msra.mxu1 %v2956_v4  ;;  %2723 = vmatprep.mubr.msk.bf16.mxu1 %vm3186_vm0, %v3185_v0  ;;  %s3202_s28 = smov 4   ;;  %p3825_p4 = scmp.ne.s32.totalorder %s3808_s0, 0 }
  0x7c   : > { %2721 = vmatprep.subr.bf16.mxu1 %v3185_v0 }
  0x7f   : > { %2722 = vmatpush3.bf16.msra.mxu1 %v2957_v6 }
  0x80   : > { %2727 = vmatprep.subr.mxu1 %v3185_v0 }
  0x82   : > { %2724 = vmatmul.mubr.msk.bf16.vlgmr.msra.gmra.mrb[4].mxu1 %vm624_vm1, %v668_v8 }
  0x83   : > { %2729 = vmatprep.mubr.msk.f32.mxu1 %vm3186_vm0, %v3185_v0 }
 0x14d   : > { %v662_v9 = vpop.f32.mrb[0].mxu1 }
 0x14e   : > { %v2717_v10 = vpop.f32.mrb[1].mxu1  ;;  %v663_v20 = vadd.f32 %v2601_v17, %v662_v9 }
 0x14f   : > { %v665_v11 = vpop.f32.mrb[2].mxu1 }
 0x150   : > { %v2718_v12 = vpop.f32.mrb[3].mxu1 }
 0x155   : > { %v729_v14 = vpop.f32.mrb[4].mxu1 }
 0x156   : > { %v3488_v15 = vadd.f32 %v2605_v13, %v729_v14  ;;  %v2725_v16 = vpop.f32.mrb[5].mxu1 }
 0x157   : > { %v732_v18 = vpop.f32.mrb[6].mxu1 }
 0x158   : > { %1086 = vrot.lane.b32.xlu1 %v3488_v15, %s3187_s16  ;;  %913 = vrot.lane.b32.xlu0 %v3488_v15, %s3188_s23  ;;  %v2726_v19 = vpop.f32.mrb[7].mxu1 }
 0x159   : > { %2728 = vmatpush3.xpose.msk.msra.mxu1 %vm743_vm2, %v3488_v15 }
 0x15a   : > { %2732 = vmatprep.subr.mxu1 %v3185_v0 }
 0x15c   : > { %2730 = vmatmul.mubr.msk.f32.vlgmr.msra.gmra.mrb[8].mxu1 %vm743_vm2, %v663_v20  ;;  %1084 = vrot.lane.b32.xlu1 %v663_v20, %s3187_s16  ;;  %s3203_s16 = smov 8  }
 0x15d   : > { %911 = vrot.lane.b32.xlu0 %v663_v20, %s3188_s23  ;;  %2734 = vmatprep.mubr.msk.f32.mxu1 %vm3186_vm0, %v3185_v0  ;;  %s3204_s23 = smov 12  }
 0x160   : > { %1257 = vrot.lane.b32.xlu1 %v663_v20, %s3189_s30 }
 0x161   : > { %1259 = vrot.lane.b32.xlu0 %v3488_v15, %s3189_s30  ;;  %s3205_s30 = smov 16  }
 0x164   : > { %1430 = vrot.lane.b32.xlu1 %v663_v20, %s3190_s19 }
 0x165   : > { %1432 = vrot.lane.b32.xlu0 %v3488_v15, %s3190_s19 }
 0x168   : > { %1603 = vrot.lane.b32.xlu1 %v663_v20, %s3191_s26 }
 0x169   : > { %1605 = vrot.lane.b32.xlu0 %v3488_v15, %s3191_s26 }
 0x16c   : > { %1776 = vrot.lane.b32.xlu1 %v663_v20, %s3192_s17 }
 0x16d   : > { %1778 = vrot.lane.b32.xlu0 %v3488_v15, %s3192_s17 }
 0x170   : > { %1949 = vrot.lane.b32.xlu1 %v663_v20, %s3193_s14 }
 0x171   : > { %1951 = vrot.lane.b32.xlu0 %v3488_v15, %s3193_s14  ;;  %s3822_s14 = sld [smem:[#allocation22_spill]] }
 0x174   : > { %1002 = vrot.lane.b32.xlu1 %v3488_v15, %s3194_s25  ;;  %s3206_s25 = smov 20  }
 0x175   : > { %834 = vrot.lane.b32.xlu0 %v3488_v15, %s3195_s15  ;;  %s3207_s15 = smov 24  }
 0x1ca   : > { %v1087_v21 = vpop.permute.xlu1 %1086  ;;  %v914_v22 = vpop.permute.xlu0 %913 }
 0x1cb   : > { %2738 = vmatpush3.xpose.msk.msra.mxu0 %vm743_vm2, %v914_v22 }
 0x1cc   : > { %2747 = vmatprep.subr.mxu0 %v3185_v0 }
 0x1ce   : > { %v1085_v23 = vpop.permute.xlu1 %1084 }
 0x1cf   : > { %v912_v24 = vpop.permute.xlu0 %911 }
 0x1d0   : > { %2740 = vmatmul.mubr.msk.f32.vlgmr.msra.gmra.mrb[0].mxu0 %vm743_vm2, %v912_v24 }
 0x1d1   : > { %2748 = vmatpush3.xpose.msk.msra.mxu0 %vm743_vm2, %v1087_v21  ;;  %2749 = vmatprep.mubr.msk.f32.mxu0 %vm3186_vm0, %v3185_v0 }
 0x1d2   : > { %v1258_v25 = vpop.permute.xlu1 %1257  ;;  %2757 = vmatprep.subr.mxu0 %v3185_v0 }
 0x1d3   : > { %v1260_v26 = vpop.permute.xlu0 %1259 }
 0x1d4   : > { %2750 = vmatmul.mubr.msk.f32.vlgmr.msra.gmra.mrb[2].mxu0 %vm743_vm2, %v1085_v23 }
 0x1d5   : > { %2758 = vmatpush3.xpose.msk.msra.mxu0 %vm743_vm2, %v1260_v26  ;;  %2759 = vmatprep.mubr.msk.f32.mxu0 %vm3186_vm0, %v3185_v0 }
 0x1d6   : > { %v1431_v27 = vpop.permute.xlu1 %1430  ;;  %2767 = vmatprep.subr.mxu0 %v3185_v0 }
 0x1d7   : > { %v1433_v28 = vpop.permute.xlu0 %1432 }
 0x1d8   : > { %2760 = vmatmul.mubr.msk.f32.vlgmr.msra.gmra.mrb[4].mxu0 %vm743_vm2, %v1258_v25 }
 0x1d9   : > { %2768 = vmatpush3.xpose.msk.msra.mxu0 %vm743_vm2, %v1433_v28  ;;  %2769 = vmatprep.mubr.msk.f32.mxu0 %vm3186_vm0, %v3185_v0 }
 0x1da   : > { %2777 = vmatprep.subr.mxu0 %v3185_v0  ;;  %v1604_v29 = vpop.permute.xlu1 %1603 }
 0x1db   : > { %v1606_v30 = vpop.permute.xlu0 %1605 }
 0x1dc   : > { %2770 = vmatmul.mubr.msk.f32.vlgmr.msra.gmra.mrb[6].mxu0 %vm743_vm2, %v1431_v27 }
 0x1dd   : > { %2778 = vmatpush3.xpose.msk.msra.mxu0 %vm743_vm2, %v1606_v30  ;;  %2779 = vmatprep.mubr.msk.f32.mxu0 %vm3186_vm0, %v3185_v0 }
 0x1de   : > { %2787 = vmatprep.subr.mxu0 %v3185_v0  ;;  %v1777_v32 = vpop.permute.xlu1 %1776 }
 0x1df   : > { %v1779_v31 = vpop.permute.xlu0 %1778 }
 0x1e0   : > { %2780 = vmatmul.mubr.msk.f32.vlgmr.msra.gmra.mrb[8].mxu0 %vm743_vm2, %v1604_v29 }
 0x1e1   : > { %2788 = vmatpush3.xpose.msk.msra.mxu0 %vm743_vm2, %v1779_v31  ;;  %2789 = vmatprep.mubr.msk.f32.mxu0 %vm3186_vm0, %v3185_v0 }
 0x1e2   : > { %2797 = vmatprep.subr.mxu0 %v3185_v0  ;;  %v1950_v34 = vpop.permute.xlu1 %1949 }
 0x1e3   : > { %v1952_v33 = vpop.permute.xlu0 %1951 }
 0x1e4   : > { %2790 = vmatmul.mubr.msk.f32.vlgmr.msra.gmra.mrb[10].mxu0 %vm743_vm2, %v1777_v32 }
 0x1e5   : > { %2798 = vmatpush3.xpose.msk.msra.mxu0 %vm743_vm2, %v1952_v33  ;;  %2799 = vmatprep.mubr.msk.f32.mxu0 %vm3186_vm0, %v3185_v0 }
 0x1e6   : > { %2807 = vmatprep.subr.bf16.mxu0 %v3185_v0  ;;  %v1003_v24 = vpop.permute.xlu1 %1002 }
 0x1e7   : > { %v835_v35 = vpop.permute.xlu0 %834 }
 0x1e8   : > { %2733 = vmatpush3.msra.mxu1 %v835_v35  ;;  %2800 = vmatmul.mubr.msk.f32.vlgmr.msra.gmra.mrb[12].mxu0 %vm743_vm2, %v1950_v34 }
 0x1e9   : > { %2742 = vmatprep.subr.mxu1 %v3185_v0  ;;  %2811 = vmatprep.mubr.msk.bf16.mxu0 %vm3186_vm0, %v3185_v0 }
 0x22f   : > { %v816_v39 = vpop.f32.mrb[8].mxu1 }
 0x230   : > { %v820_v41 = vmul.f32 0.5, %v816_v39  ;;  %v2731_v42 = vpop.f32.mrb[9].mxu1 }
 0x232   : > { %v821_v43 = vsel %vm3544_vm3, %v820_v41, -1e+30 }
 0x233   : > { %v823_v44 = vsel %vm822_vm4, %v821_v43, -inf }
 0x234   : > { %824 = vmax.xlane.f32.xlu0 %v823_v44 }
 0x2a3   : > { %v985_v45 = vpop.f32.mrb[0].mxu0 }
 0x2a4   : > { %v989_v46 = vmul.f32 0.5, %v985_v45  ;;  %v2741_v47 = vpop.f32.mrb[1].mxu0 }
 0x2a6   : > { %v990_v48 = vsel %vm3544_vm3, %v989_v46, -1e+30 }
 0x2a7   : > { %v1158_v49 = vpop.f32.mrb[2].mxu0  ;;  %v991_v50 = vsel %vm822_vm4, %v990_v48, -inf }
 0x2a8   : > { %v1162_v51 = vmul.f32 0.5, %v1158_v49  ;;  %992 = vmax.xlane.f32.xlu1 %v991_v50  ;;  %v2751_v52 = vpop.f32.mrb[3].mxu0 }
 0x2aa   : > { %v1163_v53 = vsel %vm3544_vm3, %v1162_v51, -1e+30 }
 0x2ab   : > { %v1331_v54 = vpop.f32.mrb[4].mxu0  ;;  %v1164_v55 = vsel %vm822_vm4, %v1163_v53, -inf }
 0x2ac   : > { %v1335_v56 = vmul.f32 0.5, %v1331_v54  ;;  %v2761_v57 = vpop.f32.mrb[5].mxu0  ;;  %1165 = vmax.xlane.f32.xlu0 %v1164_v55 }
 0x2ae   : > { %v1336_v58 = vsel %vm3544_vm3, %v1335_v56, -1e+30 }
 0x2af   : > { %v1504_v59 = vpop.f32.mrb[6].mxu0  ;;  %v1337_v60 = vsel %vm822_vm4, %v1336_v58, -inf }
 0x2b0   : > { %v1508_v61 = vmul.f32 0.5, %v1504_v59  ;;  %v2771_v62 = vpop.f32.mrb[7].mxu0  ;;  %1338 = vmax.xlane.f32.xlu0 %v1337_v60 }
 0x2b2   : > { %v3562_v63 = vsel %vm3544_vm3, %v1508_v61, -1e+30 }
 0x2b3   : > { %v1677_v1 = vpop.f32.mrb[8].mxu0  ;;  %v1510_v2 = vsel %vm822_vm4, %v3562_v63, -inf }
 0x2b4   : > { %v1681_v4 = vmul.f32 0.5, %v1677_v1  ;;  %1511 = vmax.xlane.f32.xlu1 %v1510_v2  ;;  %v2781_v5 = vpop.f32.mrb[9].mxu0 }
 0x2b6   : > { %v1682_v6 = vsel %vm3544_vm3, %v1681_v4, -1e+30 }
 0x2b7   : > { %v1850_v7 = vpop.f32.mrb[10].mxu0  ;;  %v1683_v8 = vsel %vm822_vm4, %v1682_v6, -inf }
 0x2b8   : > { %v1854_v9 = vmul.f32 0.5, %v1850_v7  ;;  %v2791_v10 = vpop.f32.mrb[11].mxu0  ;;  %1684 = vmax.xlane.f32.xlu0 %v1683_v8 }
 0x2ba   : > { %v1855_v11 = vsel %vm3544_vm3, %v1854_v9, -1e+30 }
 0x2bb   : > { %v2023_v12 = vpop.f32.mrb[12].mxu0  ;;  %v1856_v13 = vsel %vm822_vm4, %v1855_v11, -inf }
 0x2bc   : > { %v2027_v14 = vmul.f32 0.5, %v2023_v12  ;;  %1857 = vmax.xlane.f32.xlu1 %v1856_v13  ;;  %v2801_v16 = vpop.f32.mrb[13].mxu0 }
 0x2be   : > { %v2028_v17 = vsel %vm3544_vm3, %v2027_v14, -1e+30 }
 0x2bf   : > { %v2029_v18 = vsel %vm822_vm4, %v2028_v17, -inf }
 0x2c0   : > { %2030 = vmax.xlane.f32.xlu0 %v2029_v18 }
 0x2c1   : > { %v825_v19 = vpop.xlane.xlu0 %824 }
 0x2c2   : > { %v826_v20 = vsub.f32 %v821_v43, %v825_v19 }
 0x2c4   : > { %v827_v21 = vmul.f32 1.442695, %v826_v20 }
 0x2c6   : > { %2970 = vpow2.f32 %v827_v21 }
 0x2cd   : > { %1348 = vrot.lane.b32.xlu1 %v3488_v15, %s3196_s18  ;;  %s3208_s18 = smov 28  }
 0x2d0   : > { %v2971_v22 = vpop.eup %2970 }
 0x2d1   : > { %v829_v23 = vsel %vm822_vm4, %v2971_v22, 0.0 }
 0x2d6   : > { %1175 = vrot.lane.b32.xlu0 %v3488_v15, %s3197_s27  ;;  %s2655_s27 = sshll.u32 %s3172_s24, 7  ;;  %s3210_s24 = smov [#allocation9]  }
 0x2f1   : > { %830 = vadd.xlane.f32.xlu1 %v829_v23 }
 0x335   : > { %v993_v25 = vpop.xlane.xlu1 %992 }
 0x336   : > { %v994_v26 = vsub.f32 %v990_v48, %v993_v25 }
 0x338   : > { %v995_v27 = vmul.f32 1.442695, %v994_v26 }
 0x339   : > { %v1166_v28 = vpop.xlane.xlu0 %1165 }
 0x33a   : > { %2972 = vpow2.f32 %v995_v27  ;;  %v1167_v29 = vsub.f32 %v1163_v53, %v1166_v28 }
 0x33c   : > { %v1168_v30 = vmul.f32 1.442695, %v1167_v29 }
 0x33d   : > { %v1339_v31 = vpop.xlane.xlu0 %1338 }
 0x33e   : > { %2974 = vpow2.f32 %v1168_v30  ;;  %v1340_v32 = vsub.f32 %v1336_v58, %v1339_v31 }
 0x340   : > { %v1341_v33 = vmul.f32 1.442695, %v1340_v32 }
 0x341   : > { %v1512_v40 = vpop.xlane.xlu1 %1511 }
 0x342   : > { %2976 = vpow2.f32 %v1341_v33  ;;  %v1513_v41 = vsub.f32 %v3562_v63, %v1512_v40 }
 0x344   : > { %v2973_v34 = vpop.eup %2972  ;;  %v1514_v45 = vmul.f32 1.442695, %v1513_v41 }
 0x345   : > { %v997_v35 = vsel %vm822_vm4, %v2973_v34, 0.0  ;;  %v1685_v42 = vpop.xlane.xlu0 %1684 }
 0x346   : > { %998 = vadd.xlane.f32.xlu0 %v997_v35  ;;  %v1686_v44 = vsub.f32 %v1682_v6, %v1685_v42  ;;  %2978 = vpow2.f32 %v1514_v45 }
 0x348   : > { %v3579_v36 = vpop.eup %2974  ;;  %v1687_v48 = vmul.f32 1.442695, %v1686_v44 }
 0x349   : > { %v1170_v37 = vsel %vm822_vm4, %v3579_v36, 0.0  ;;  %v1858_v43 = vpop.xlane.xlu1 %1857 }
 0x34a   : > { %1171 = vadd.xlane.f32.xlu1 %v1170_v37  ;;  %v1859_v46 = vsub.f32 %v1855_v11, %v1858_v43  ;;  %2980 = vpow2.f32 %v1687_v48 }
 0x34c   : > { %v3583_v38 = vpop.eup %2976  ;;  %v1860_v49 = vmul.f32 1.442695, %v1859_v46 }
 0x34d   : > { %v1343_v39 = vsel %vm822_vm4, %v3583_v38, 0.0  ;;  %v2031_v47 = vpop.xlane.xlu0 %2030  ;;  %v1349_v52 = vpop.permute.xlu1 %1348 }
 0x34e   : > { %1344 = vadd.xlane.f32.xlu0 %v1343_v39  ;;  %v2032_v50 = vsub.f32 %v2028_v17, %v2031_v47  ;;  %2982 = vpow2.f32 %v1860_v49  ;;  %v2959_v39 = vld [vmem:[%s3775_s6 + $0x8] sm:$0xff]  }
 0x350   : > { %v2033_v51 = vmul.f32 1.442695, %v2032_v50  ;;  %v2979_v53 = vpop.eup %2978 }
 0x351   : > { %v1516_v56 = vsel %vm822_vm4, %v2979_v53, 0.0  ;;  %v1176_v1 = vpop.permute.xlu0 %1175 }
 0x352   : > { %2984 = vpow2.f32 %v2033_v51 }
 0x354   : > { %v3590_v54 = vpop.eup %2980 }
 0x355   : > { %v1689_v59 = vsel %vm822_vm4, %v3590_v54, 0.0 }
 0x358   : > { %v3593_v57 = vpop.eup %2982 }
 0x359   : > { %v1862_v58 = vsel %vm822_vm4, %v3593_v57, 0.0 }
 0x35b   : > { %1694 = vrot.lane.b32.xlu1 %v3488_v15, %s3198_s8 }
 0x35c   : > { %v3599_v60 = vpop.eup %2984 }
 0x35d   : > { %v2035_v61 = vsel %vm822_vm4, %v3599_v60, 0.0 }
 0x364   : > { %1521 = vrot.lane.b32.xlu0 %v3488_v15, %s3199_s29 }
 0x37e   : > { %v831_v55 = vpop.xlane.xlu1 %830 }
 0x37f   : > { %2986 = vrcp.f32 %v831_v55  ;;  %1517 = vadd.xlane.f32.xlu1 %v1516_v56  ;;  %v2633_v55 = vld [vmem:[#allocation3] ss:$0 sm:$0xff] }
 0x383   : > { %1863 = vadd.xlane.f32.xlu1 %v1862_v58  ;;  %1690 = vadd.xlane.f32.xlu0 %v1689_v59 }
 0x387   : > { %2036 = vadd.xlane.f32.xlu1 %v2035_v61 }
 0x389   : > { %v2987_v62 = vpop.eup %2986 }
 0x38a   : > { %v833_v63 = vmul.f32 %v2987_v62, %v2971_v22 }
 0x38c   : > { %2735 = vmatmul.mubr.msk.f32.vlgmr.msra.gmra.mrb[10].mxu1 %vm822_vm4, %v833_v63 }
 0x38d   : > { %2743 = vmatpush3.msra.mxu1 %v1003_v24  ;;  %2744 = vmatprep.mubr.msk.f32.mxu1 %vm3186_vm0, %v3185_v0 }
 0x38e   : > { %2752 = vmatprep.subr.mxu1 %v3185_v0 }
 0x398   : > { %2040 = vrot.lane.b32.xlu1 %v3488_v15, %s3200_s20 }
 0x399   : > { %1867 = vrot.lane.b32.xlu0 %v3488_v15, %s3201_s21 }
 0x3d3   : > { %v999_v2 = vpop.xlane.xlu0 %998 }
 0x3d4   : > { %2988 = vrcp.f32 %v999_v2 }
 0x3d7   : > { %v1172_v4 = vpop.xlane.xlu1 %1171 }
 0x3d8   : > { %2990 = vrcp.f32 %v1172_v4 }
 0x3db   : > { %v1345_v5 = vpop.xlane.xlu0 %1344  ;;  %v1695_v12 = vpop.permute.xlu1 %1694 }
 0x3dc   : > { %2992 = vrcp.f32 %v1345_v5 }
 0x3de   : > { %v2989_v6 = vpop.eup %2988 }
 0x3df   : > { %v1001_v7 = vmul.f32 %v2989_v6, %v2973_v34  ;;  %v1522_v11 = vpop.permute.xlu0 %1521  ;;  %v2960_v6 = vld [vmem:[%s3779_s10] sm:$0xff]  }
 0x3e1   : > { %2745 = vmatmul.mubr.msk.f32.vlgmr.msra.gmra.mrb[12].mxu1 %vm822_vm4, %v1001_v7  ;;  %v2961_v7 = vld [vmem:[%s3779_s10 + $0x8] sm:$0xff]  }
 0x3e2   : > { %v2991_v8 = vpop.eup %2990  ;;  %2753 = vmatpush3.msra.mxu1 %v1176_v1  ;;  %2754 = vmatprep.mubr.msk.f32.mxu1 %vm3186_vm0, %v3185_v0 }
 0x3e3   : > { %v1174_v9 = vmul.f32 %v2991_v8, %v3579_v36  ;;  %2762 = vmatprep.subr.mxu1 %v3185_v0 }
 0x3e5   : > { %2755 = vmatmul.mubr.msk.f32.vlgmr.msra.gmra.mrb[14].mxu1 %vm822_vm4, %v1174_v9 }
 0x3e6   : > { %v2993_v15 = vpop.eup %2992  ;;  %2763 = vmatpush3.msra.mxu1 %v1349_v52  ;;  %2764 = vmatprep.mubr.msk.f32.mxu1 %vm3186_vm0, %v3185_v0 }
 0x3e7   : > { %v1347_v10 = vmul.f32 %v2993_v15, %v3583_v38  ;;  %2772 = vmatprep.subr.mxu1 %v3185_v0  ;;  %v2958_v38 = vld [vmem:[%s3775_s6] sm:$0xff]  }
 0x3e8   : > { %2808 = vmatpush3.bf16.msra.mxu0 %v2958_v38 }
 0x3e9   : > { %2765 = vmatmul.mubr.msk.f32.vlgmr.msra.gmra.mrb[16].mxu1 %vm822_vm4, %v1347_v10  ;;  %2809 = vmatprep.subr.bf16.mxu0 %v3185_v0  ;;  %v2637_v10 = vld [vmem:[#allocation6] ss:$0 sm:$0xff] }
 0x3ea   : > { %2773 = vmatpush3.msra.mxu1 %v1522_v11  ;;  %2774 = vmatprep.mubr.msk.f32.mxu1 %vm3186_vm0, %v3185_v0 }
 0x3eb   : > { %2782 = vmatprep.subr.mxu1 %v3185_v0 }
 0x3ec   : > { %2810 = vmatpush3.bf16.msra.mxu0 %v2959_v39 }
 0x3ed   : > { %2823 = vmatprep.subr.bf16.mxu0 %v3185_v0 }
 0x40c   : > { %v1518_v13 = vpop.xlane.xlu1 %1517 }
 0x40d   : > { %2994 = vrcp.f32 %v1518_v13 }
 0x410   : > { %v1864_v14 = vpop.xlane.xlu1 %1863  ;;  %v1691_v16 = vpop.xlane.xlu0 %1690 }
 0x411   : > { %2996 = vrcp.f32 %v1691_v16 }
 0x412   : > { %2998 = vrcp.f32 %v1864_v14 }
 0x414   : > { %v2037_v17 = vpop.xlane.xlu1 %2036  ;;  %v1868_v23 = vpop.permute.xlu0 %1867 }
 0x415   : > { %3000 = vrcp.f32 %v2037_v17  ;;  %v2962_v17 = vld [vmem:[%s3781_s12] sm:$0xff]  }
 0x417   : > { %v2995_v18 = vpop.eup %2994 }
 0x418   : > { %v1520_v19 = vmul.f32 %v2995_v18, %v2979_v53  ;;  %v2041_v26 = vpop.permute.xlu1 %2040  ;;  %v2963_v18 = vld [vmem:[%s3781_s12 + $0x8] sm:$0xff]  }
 0x41a   : > { %2775 = vmatmul.mubr.msk.f32.vlgmr.msra.gmra.mrb[18].mxu1 %vm822_vm4, %v1520_v19  ;;  %v2964_v19 = vld [vmem:[%s3781_s12 + $0x10] sm:$0xff]  }
 0x41b   : > { %2783 = vmatpush3.msra.mxu1 %v1695_v12  ;;  %2784 = vmatprep.mubr.msk.f32.mxu1 %vm3186_vm0, %v3185_v0  ;;  %v2997_v20 = vpop.eup %2996  ;;  %v2638_v12 = vld [vmem:[#allocation8] ss:$0 sm:$0xff] }
 0x41c   : > { %2792 = vmatprep.subr.mxu1 %v3185_v0  ;;  %v1693_v21 = vmul.f32 %v2997_v20, %v3590_v54  ;;  %v2999_v22 = vpop.eup %2998  ;;  %v2965_v20 = vld [vmem:[%s3781_s12 + $0x18] sm:$0xff]  }
 0x41d   : > { %v1866_v24 = vmul.f32 %v2999_v22, %v3593_v57  ;;  %v2967_v22 = vld [vmem:[%s3781_s12 + $0x28] sm:$0xff]  }
 0x41e   : > { %2785 = vmatmul.mubr.msk.f32.vlgmr.msra.gmra.mrb[20].mxu1 %vm822_vm4, %v1693_v21  ;;  %v2966_v21 = vld [vmem:[%s3781_s12 + $0x20] sm:$0xff]  }
 0x41f   : > { %2793 = vmatpush3.msra.mxu1 %v1868_v23  ;;  %2794 = vmatprep.mubr.msk.f32.mxu1 %vm3186_vm0, %v3185_v0  ;;  %v3001_v25 = vpop.eup %3000  ;;  %v2968_v23 = vld [vmem:[%s3781_s12 + $0x30] sm:$0xff]  }
 0x420   : > { %2802 = vmatprep.subr.mxu1 %v3185_v0  ;;  %v2039_v27 = vmul.f32 %v3001_v25, %v3599_v60  ;;  %v2639_v25 = vld [vmem:[%s3780_s11] ss:$0 sm:$0xff] }
 0x422   : > { %2795 = vmatmul.mubr.msk.f32.vlgmr.msra.gmra.mrb[22].mxu1 %vm822_vm4, %v1866_v24  ;;  %v2969_v24 = vld [vmem:[%s3781_s12 + $0x38] sm:$0xff]  }
 0x423   : > { %2803 = vmatpush3.msra.mxu1 %v2041_v26  ;;  %2804 = vmatprep.mubr.msk.f32.mxu1 %vm3186_vm0, %v3185_v0 }
 0x424   : > { %2815 = vmatprep.subr.bf16.mxu1 %v3185_v0 }
 0x426   : > { %2805 = vmatmul.mubr.msk.f32.vlgmr.msra.gmra.mrb[24].mxu1 %vm822_vm4, %v2039_v27 }
 0x427   : > { %2819 = vmatprep.mubr.msk.bf16.mxu1 %vm3186_vm0, %v3185_v0  ;;  %2816 = vmatpush3.bf16.msra.mxu1 %v2960_v6 }
 0x428   : > { %2817 = vmatprep.subr.bf16.mxu1 %v3185_v0 }
 0x42b   : > { %2818 = vmatpush3.bf16.msra.mxu1 %v2961_v7 }
 0x45f   : > { %v906_v28 = vpop.f32.mrb[10].mxu1 }
 0x460   : > { %910 = vst.msk [vmem:[#allocation2] sm:$0xff] %vm743_vm2, %v906_v28  ;;  %v2736_v29 = vpop.f32.mrb[11].mxu1 }
 0x4b4   : > { %v1074_v30 = vpop.f32.mrb[12].mxu1 }
 0x4b5   : > { %1079 = vrot.lane.b32.xlu0 %v1074_v30, %s3202_s28  ;;  %v2746_v31 = vpop.f32.mrb[13].mxu1  ;;  %s3824_s28 = sld [smem:[#allocation24_spill]] }
 0x4b8   : > { %v1247_v32 = vpop.f32.mrb[14].mxu1 }
 0x4b9   : > { %1252 = vrot.lane.b32.xlu1 %v1247_v32, %s3203_s16  ;;  %v2756_v33 = vpop.f32.mrb[15].mxu1 }
 0x4bb   : > { %s3721_s16 = scalar_lea.hbm %s3824_s28, %s2655_s27 }
 0x4bc   : > { %v1420_v34 = vpop.f32.mrb[16].mxu1 }
 0x4bd   : > { %1425 = vrot.lane.b32.xlu0 %v1420_v34, %s3204_s23  ;;  %v2766_v35 = vpop.f32.mrb[17].mxu1 }
 0x4ed   : > { %v1593_v36 = vpop.f32.mrb[18].mxu1 }
 0x4ee   : > { %1598 = vrot.lane.b32.xlu1 %v1593_v36, %s3205_s30  ;;  %v2776_v37 = vpop.f32.mrb[19].mxu1  ;;  %s583_s30 = sand.u32 1, %s3164_s22  }
 0x4ef   : > { %s2598_s19 = sshll.u32 %s583_s30, 3  ;;  %s2459_s23 = scalar_lea.sflag [#allocation5], %s583_s30 }
 0x4f0   : > { %s585_s8 = scalar_lea.vmem [#allocation9], %s2598_s19  ;;  %s3098_s19 = sshll.u32 %s3210_s24, 4  ;;  %s3099_s19 = int_to_ptr.vmem [resolvable:$false] %s3098_s19 }
 0x4f1   : > { %v1766_v40 = vpop.f32.mrb[20].mxu1  ;;  %s2473_s29 = sshll.u32 %s585_s8, 4  ;;  %s3100_s17 = scalar_lea.vmem %s3099_s19, 256  ;;  %s3723_s29 = int_to_ptr.vmem [resolvable:$true] %s2473_s29 }
 0x4f2   : > { %1771 = vrot.lane.b32.xlu0 %v1766_v40, %s3206_s25  ;;  %v2786_v41 = vpop.f32.mrb[21].mxu1  ;;  %s3094_s26 = scalar_lea.vmem %s3723_s29, 128  ;;  %p3101_p11 = scmp.lt.s32.totalorder %s3723_s29, %s3099_s19 }
 0x4f3   : > { %p3095_p13 = scmp.ne.s32.totalorder %s3723_s29, %s3094_s26  ;;  %p3102_p3 = scmp.lt.s32.totalorder %s3100_s17, %s3094_s26 }
 0x4f5   : > { %v1939_v42 = vpop.f32.mrb[22].mxu1  ;;  %p3096_p8 = pnand %p3095_p13, %p3825_p4  ;;  %p3103_p5 = por %p3102_p3, %p3101_p11 }
 0x4f6   : > { %1944 = vrot.lane.b32.xlu1 %v1939_v42, %s3207_s15  ;;  %v2796_v43 = vpop.f32.mrb[23].mxu1 }
 0x4f7   : > { %p3097_p10 = pneg %p3096_p8 }
 0x4f9   : > { %v2112_v44 = vpop.f32.mrb[24].mxu1  ;;  %p3104_p6 = pnand %p3103_p5, %p3097_p10 }
 0x4fa   : > { %2117 = vrot.lane.b32.xlu0 %v2112_v44, %s3208_s18  ;;  %v2806_v45 = vpop.f32.mrb[25].mxu1  ;;  %s3823_s18 = sld [smem:[#allocation23_spill]] }
 0x527   : > { %v1080_v46 = vpop.permute.xlu0 %1079 }
 0x528   : > { %1083 = vst.msk [vmem:[#allocation2] sm:$0xff] %vm1082_vm5, %v1080_v46 }
 0x52b   : > { %v1253_v47 = vpop.permute.xlu1 %1252 }
 0x52c   : > { %1256 = vst.msk [vmem:[#allocation2] sm:$0xff] %vm1255_vm6, %v1253_v47 }
 0x52f   : > { %v1426_v48 = vpop.permute.xlu0 %1425 }
 0x530   : > { %1429 = vst.msk [vmem:[#allocation2] sm:$0xff] %vm1428_vm7, %v1426_v48 }
 0x560   : > { %v1599_v49 = vpop.permute.xlu1 %1598 }
 0x561   : > { %1602 = vst.msk [vmem:[#allocation2] sm:$0xff] %vm1601_vm8, %v1599_v49 }
 0x564   : > { %v1772_v50 = vpop.permute.xlu0 %1771 }
 0x565   : > { %1775 = vst.msk [vmem:[#allocation2] sm:$0xff] %vm1774_vm9, %v1772_v50 }
 0x568   : > { %v1945_v51 = vpop.permute.xlu1 %1944 }
 0x569   : > { %1948 = vst.msk [vmem:[#allocation2] sm:$0xff] %vm1947_vm10, %v1945_v51  ;;  %v3209_v51 = vmov -1.0  }
 0x56c   : > { %v2118_v52 = vpop.permute.xlu0 %2117 }
 0x56d   : > { %2121 = vst.msk [vmem:[#allocation2] sm:$0xff] %vm2120_vm11, %v2118_v52 }
 0x574   : > { %v2122_v53 = vld [vmem:[#allocation2] sm:$0xff] }
 0x575   : > { %v2123_v54 = vpack.c.bf16 %v2122_v53, %v2122_v53 }
 0x577   : > { %2812 = vmatmul.mubr.msk.bf16.vlgmr.msra.gmra.mrb[16].mxu0 %vm624_vm1, %v2123_v54 }
 0x578   : > { %2839 = vmatprep.mubr.msk.bf16.mxu0 %vm3186_vm0, %v3185_v0  ;;  %2824 = vmatpush3.bf16.msra.mxu0 %v2962_v17 }
 0x579   : > { %2825 = vmatprep.subr.bf16.mxu0 %v3185_v0 }
 0x57c   : > { %2826 = vmatpush3.bf16.msra.mxu0 %v2963_v18 }
 0x57d   : > { %2827 = vmatprep.subr.bf16.mxu0 %v3185_v0 }
 0x580   : > { %2828 = vmatpush3.bf16.msra.mxu0 %v2964_v19 }
 0x581   : > { %2829 = vmatprep.subr.bf16.mxu0 %v3185_v0 }
 0x584   : > { %2830 = vmatpush3.bf16.msra.mxu0 %v2965_v20 }
 0x585   : > { %2831 = vmatprep.subr.bf16.mxu0 %v3185_v0 }
 0x588   : > { %2832 = vmatpush3.bf16.msra.mxu0 %v2966_v21 }
 0x589   : > { %2833 = vmatprep.subr.bf16.mxu0 %v3185_v0 }
 0x58c   : > { %2834 = vmatpush3.bf16.msra.mxu0 %v2967_v22 }
 0x58d   : > { %2835 = vmatprep.subr.bf16.mxu0 %v3185_v0 }
 0x590   : > { %2836 = vmatpush3.bf16.msra.mxu0 %v2968_v23 }
 0x591   : > { %2837 = vmatprep.subr.bf16.mxu0 %v3185_v0 }
 0x594   : > { %2838 = vmatpush3.bf16.msra.mxu0 %v2969_v24 }
 0x64a   : > { %v2184_v56 = vpop.f32.mrb[16].mxu0 }
 0x64b   : > { %v2185_v57 = vadd.f32 %v2633_v55, %v2184_v56  ;;  %v2813_v58 = vpop.f32.mrb[17].mxu0 }
 0x64c   : > { %v2187_v59 = vpop.f32.mrb[18].mxu0  ;;  %v2643_v58 = vld [vmem:[%s3782_s13] ss:$0 sm:$0xff] }
 0x64d   : > { %v2814_v60 = vpop.f32.mrb[19].mxu0  ;;  %v2190_v61 = vadd.f32 %v2185_v57, %v3462_v3 }
 0x64f   : > { %v2193_v62 = vsel %vm624_vm1, %v2190_v61, 0.0 }
 0x650   : > { %2194 = vadd.xlane.f32.xlu1 %v2193_v62 }
 0x6dd   : > { %v2195_v63 = vpop.xlane.xlu1 %2194 }
 0x6de   : > { %v2197_v1 = vmul.f32 0.03125, %v2195_v63 }
 0x6e0   : > { %v2198_v2 = vsub.f32 %v2190_v61, %v2197_v1 }
 0x6e2   : > { %v2199_v4 = vmul.f32 %v2198_v2, %v2198_v2 }
 0x6e4   : > { %v2200_v5 = vsel %vm624_vm1, %v2199_v4, 0.0 }
 0x6e5   : > { %2201 = vadd.xlane.f32.xlu0 %v2200_v5 }
 0x772   : > { %v2202_v3 = vpop.xlane.xlu0 %2201 }
 0x773   : > { %v2203_v8 = vmul.f32 0.03125, %v2202_v3 }
 0x775   : > { %v2204_v9 = vadd.f32 1e-05, %v2203_v8 }
 0x777   : > { %3002 = vrsqrt.f32 %v2204_v9 }
 0x781   : > { %v3003_v15 = vpop.eup %3002 }
 0x782   : > { %v2206_v11 = vmul.f32 %v3003_v15, %v2198_v2 }
 0x784   : > { %v2213_v13 = vmul.f32 %v2637_v10, %v2206_v11  ;;  %v2652_v11 = vld [vmem:[%s3822_s14] ss:$0 sm:$0xff] }
 0x786   : > { %v3663_v14 = vadd.f32 %v2638_v12, %v2213_v13  ;;  %v2653_v13 = vld [vmem:[%s3823_s18] ss:$0 sm:$0xff] }
 0x788   : > { %v2221_v16 = vpack.c.bf16 %v3663_v14, %v3663_v14 }
 0x78a   : > { %2820 = vmatmul.mubr.msk.bf16.vlgmr.msra.gmra.mrb[28].mxu1 %vm624_vm1, %v2221_v16 }
 0x85d   : > { %v2282_v26 = vpop.f32.mrb[28].mxu1 }
 0x85e   : > { %v2283_v27 = vadd.f32 %v2639_v25, %v2282_v26  ;;  %v2821_v28 = vpop.f32.mrb[29].mxu1 }
 0x85f   : > { %v2285_v29 = vpop.f32.mrb[30].mxu1 }
 0x860   : > { %v2289_v30 = vmul.f32 0.70710677, %v2283_v27  ;;  %v2822_v31 = vpop.f32.mrb[31].mxu1  ;;  %v2288_v54 = vmul.f32 0.5, %v2283_v27 }
 0x862   : > { %vm2290_vm12 = vcmp.ge.f32.partialorder %v2289_v30, 0.0  ;;  %v2292_v32 = vsub.f32 0.0, %v2289_v30 }
 0x863   : > { %v2291_v52 = vsel %vm2290_vm12, 1.0, %v3209_v51 }
 0x864   : > { %v2293_v33 = vsel %vm2290_vm12, %v2289_v30, %v2292_v32 }
 0x865   : > { %v2294_v0 = vmul.f32 0.3275911, %v2293_v33  ;;  %v2306_v35 = vsub.f32 0.0, %v2293_v33 }
 0x867   : > { %v2295_v34 = vadd.f32 1.0, %v2294_v0  ;;  %v2307_v37 = vmul.f32 %v2306_v35, %v2293_v33 }
 0x869   : > { %3004 = vrcp.f32 %v2295_v34  ;;  %v2308_v40 = vmul.f32 1.442695, %v2307_v37 }
 0x86b   : > { %3006 = vpow2.f32 %v2308_v40 }
 0x873   : > { %v3005_v36 = vpop.eup %3004 }
 0x874   : > { %v2297_v38 = vmul.f32 1.0614054, %v3005_v36 }
 0x875   : > { %v3007_v48 = vpop.eup %3006 }
 0x876   : > { %v2298_v39 = vadd.f32 -1.4531521, %v2297_v38 }
 0x878   : > { %v2299_v41 = vmul.f32 %v3005_v36, %v2298_v39 }
 0x87a   : > { %v2300_v42 = vadd.f32 1.4214138, %v2299_v41 }
 0x87c   : > { %v2301_v43 = vmul.f32 %v3005_v36, %v2300_v42 }
 0x87e   : > { %v2302_v44 = vadd.f32 -0.28449672, %v2301_v43 }
 0x880   : > { %v2303_v45 = vmul.f32 %v3005_v36, %v2302_v44 }
 0x882   : > { %v2304_v46 = vadd.f32 0.2548296, %v2303_v45 }
 0x884   : > { %v2305_v47 = vmul.f32 %v3005_v36, %v2304_v46 }
 0x886   : > { %v2310_v49 = vmul.f32 %v3007_v48, %v2305_v47 }
 0x888   : > { %v2311_v50 = vsub.f32 1.0, %v2310_v49 }
 0x88a   : > { %v2312_v53 = vmul.f32 %v2311_v50, %v2291_v52 }
 0x88c   : > { %v2313_v55 = vadd.f32 1.0, %v2312_v53 }
 0x88e   : > { %v2314_v56 = vmul.f32 %v2313_v55, %v2288_v54 }
 0x890   : > { %v2315_v57 = vpack.c.bf16 %v2314_v56, %v2314_v56 }
 0x892   : > { %2840 = vmatmul.mubr.bf16.vlgmr.msra.gmra.mrb[20].mxu0 %v2315_v57 }
 0x965   : > { %v2421_v59 = vpop.f32.mrb[20].mxu0 }
 0x966   : > { %v2422_v60 = vadd.f32 %v2643_v58, %v2421_v59  ;;  %v2841_v61 = vpop.f32.mrb[21].mxu0 }
 0x967   : > { %v2424_v62 = vpop.f32.mrb[22].mxu0 }
 0x968   : > { %v2842_v63 = vpop.f32.mrb[23].mxu0  ;;  %v2427_v1 = vadd.f32 %v2422_v60, %v3663_v14 }
 0x96a   : > { %v2430_v2 = vsel %vm624_vm1, %v2427_v1, 0.0 }
 0x96b   : > { %2431 = vadd.xlane.f32.xlu0 %v2430_v2 }
 0x9f8   : > { %v2432_v4 = vpop.xlane.xlu0 %2431 }
 0x9f9   : > { %v2433_v5 = vmul.f32 0.03125, %v2432_v4 }
 0x9fb   : > { %v2434_v6 = vsub.f32 %v2427_v1, %v2433_v5 }
 0x9fd   : > { %v2435_v7 = vmul.f32 %v2434_v6, %v2434_v6 }
 0x9ff   : > { %v2436_v3 = vsel %vm624_vm1, %v2435_v7, 0.0 }
 0xa00   : > { %2437 = vadd.xlane.f32.xlu1 %v2436_v3 }
 0xa8d   : > { %v2438_v8 = vpop.xlane.xlu1 %2437 }
 0xa8e   : > { %v2439_v9 = vmul.f32 0.03125, %v2438_v8 }
 0xa90   : > { %v2440_v15 = vadd.f32 1e-05, %v2439_v9 }
 0xa92   : > { %3008 = vrsqrt.f32 %v2440_v15 }
 0xa9c   : > { %v3009_v10 = vpop.eup %3008 }
 0xa9d   : > { %v2442_v12 = vmul.f32 %v3009_v10, %v2434_v6 }
 0xa9f   : > { %v2449_v14 = vmul.f32 %v2652_v11, %v2442_v12 }
 0xaa1   : > { %v2456_v16 = vadd.f32 %v2653_v13, %v2449_v14 }
 0xaa3   : > { %2457 = vst.msk [vmem:[%s585_s8] sm:$0xff] %vm624_vm1, %v2456_v16 }
 0xaa4   : > { %3107 = shalt.err (!%p3104_p6)
}
 0xaa5   : > { %s3108_s30 = scalar_lea.hbm %s3721_s16, 128  ;;  %s3112_s15 = scalar_lea.hbm %s3824_s28, 256 }
 0xaa6   : > { %p3109_p7 = scmp.ne.s32.totalorder %s3721_s16, %s3108_s30  ;;  %p3113_p0 = scmp.lt.u32.totalorder %s3721_s16, %s3824_s28 }
 0xaa7   : > { %p3114_p2 = scmp.lt.u32.totalorder %s3112_s15, %s3108_s30  ;;  %p3116_p13 = scmp.lt.u32.totalorder %s3108_s30, %s3721_s16 }
 0xaa8   : > { %p3110_p9 = pnand %p3109_p7, %p3825_p4 }
 0xaa9   : > { %p3115_p1 = por %p3114_p2, %p3113_p0 }
 0xaaa   : > { %p3111_p12 = pneg %p3110_p9 }
 0xaab   : > { %p3117_p8 = por %p3116_p13, %p3115_p1 }
 0xaad   : > { %p3118_p10 = pnand %p3117_p8, %p3111_p12 }
 0xaaf   : > { %3121 = shalt.err (!%p3118_p10)
}
 0xab0   : > { %2855 = dma.vmem_to_hbm [thread:$0]  (%p3825_p4), %s3723_s29, 128, %s3721_s16, %s2459_s23  }
 0xab1 PF: > { %s3826_s8 = sld [smem:[#allocation16_spill]]  ;;  %s3827_s20 = sld [smem:[#allocation13_spill]] }
 0xab2   : > { %s3828_s21 = sld [smem:[#allocation18_spill]] }
 0xab7   : > { %p2877_p11 = scmp.ge.s32.totalorder %s3826_s8, 2  ;;  %s2485_s26 = sand.u32 1, %s3827_s20  }
 0xab8   : > { %p3829_p3 = scmp.ne.s32.totalorder %s3828_s21, 0  ;;  %s2486_s24 = scalar_lea.sflag [#allocation5], %s2485_s26 }
 0xaba   : > { %p2868_p5 = pnand %p2877_p11, %p3829_p3 }
 0xabc   : > { %3155 = dma.done.wait (!%p2868_p5), %s2486_s24, 128  }
 0xabd   : > { %3157 = vsyncadd (!%p2868_p5), %s2486_s24, 4294967168  ;;  %s31_s26 = sadd.s32 1, %s3826_s8   ;;  %s3830_s19 = sld [smem:[#allocation14_spill]] }
 0xabe   : > { %p28_p6 = scmp.ge.s32.totalorder %s31_s26, 4   ;;  %s3831_s23 = sld [smem:[#allocation19_spill]] }
 0xabf   : > { %s3832_s24 = sld [smem:[#allocation15_spill]]  ;;  %s3833_s25 = sld [smem:[#allocation17_spill]] }
 0xac0   : > { %s3834_s21 = smov %s3164_s22  ;;  %30 = sbr.rel (!%p28_p6) target bundleno = 12 (0xc), region = 135 }
 0xac3   : > { %s3835_s22 = smov %s3830_s19 }
 0xac7   :  { %2491 = vsyncpa [#allocation4], 1 }
 0xac8   :  { %2493 = vsyncpa [#allocation4 + $0x1], 1 }
 0xac9   :  { %2494 = vsyncpa [#allocation7], 1 }
 0xaca   :  { %2495 = vsyncpa [#allocation5], 1 }
 0xacb   :  { %2497 = vsyncpa [#allocation5 + $0x1], 1 }

</bundles_post_ra>
